<compile_context>
chip_gen: v7x
topology: tpu7x:2x2x1
jax: 0.10.0
libtpu: 0.0.40
codegen_flags: <defaults>
</compile_context>

<pallas_src>
import jax
import jax.numpy as jnp
from jax.experimental import pallas as pl
from jax.experimental.pallas import tpu as pltpu


# --------------------------- the Pallas kernel ---------------------------

def _make_tagger_kernel(T, H):
    H2 = 2 * H                      # fused state width (fwd | bwd)
    unroll = True if T <= 16 else 8

    def kernel(x_ref,
               wa0_ref, wb0_ref, whh0_ref, b0_ref,
               wa1_ref, wb1_ref, whh1_ref, b1_ref,
               wout_ref, bout_ref,
               o_ref,
               gxa_ref, gxb_ref, l0_ref, l1_ref):

        def fused_bilstm(x_mm, wa_ref, wb_ref, whh_ref, b_ref, out_ref):
            # Hoisted input projections for all T steps (MXU, bf16 operands,
            # f32 accumulation).  Both use the forward-order input:
            #   gxa row t = fwd-direction ih-gates of x_t   (+ full bias)
            #   gxb row t = bwd-direction ih-gates of x_t
            # The recurrence reads gxb at row T-1-t, so no reversed input /
            # time-flip matmul is ever materialized.
            gxa_ref[...] = (jnp.dot(x_mm, wa_ref[...],
                                    preferred_element_type=jnp.float32)
                            + b_ref[...])
            gxb_ref[...] = jnp.dot(x_mm, wb_ref[...],
                                   preferred_element_type=jnp.float32)

            whh = whh_ref[...]                          # (2H, 8H) block-diag

            def step(t, carry):
                h, c = carry                            # (1, 2H) = [fwd|bwd]
                gates = (gxa_ref[pl.ds(t, 1), :]
                         + gxb_ref[pl.ds(T - 1 - t, 1), :]
                         + jnp.dot(h.astype(whh.dtype), whh,
                                   preferred_element_type=jnp.float32))
                # Gate order [i|f|o|g]: sigmoid over the contiguous first 6H
                # lanes, tanh only over the last 2H (g) lanes.
                sg = jax.nn.sigmoid(gates[:, :3 * H2])
                g_g = jnp.tanh(gates[:, 3 * H2:])
                i_g = sg[:, :H2]
                f_g = sg[:, H2:2 * H2]
                o_g = sg[:, 2 * H2:]
                c_new = f_g * c + i_g * g_g
                h_new = o_g * jnp.tanh(c_new)
                # Forward half is the output for time t, backward half for
                # time T-1-t (PyTorch bi-LSTM output layout).
                out_ref[pl.ds(t, 1), :H] = h_new[:, :H]
                out_ref[pl.ds(T - 1 - t, 1), H:] = h_new[:, H:]
                return h_new, c_new

            zero = jnp.zeros((1, H2), jnp.float32)
            jax.lax.fori_loop(0, T, step, (zero, zero), unroll=unroll)

        # ----- LSTM layer 0 (input: embeddings, already bf16) -----
        fused_bilstm(x_ref[...], wa0_ref, wb0_ref, whh0_ref, b0_ref, l0_ref)
        # ----- LSTM layer 1 (input: layer-0 bi-output) -----
        fused_bilstm(l0_ref[...].astype(wa1_ref.dtype),
                     wa1_ref, wb1_ref, whh1_ref, b1_ref, l1_ref)

        # ----- hidden2tag Linear + log_softmax(dim=1), lane-dense KP wide ---
        tag = (jnp.dot(l1_ref[...].astype(wout_ref.dtype), wout_ref[...],
                       preferred_element_type=jnp.float32)
               + bout_ref[...])                         # pads carry -1e30 bias
        m = jnp.max(tag, axis=1, keepdims=True)
        z = tag - m
        o_ref[...] = z - jnp.log(jnp.sum(jnp.exp(z), axis=1, keepdims=True))

    return kernel


# ----------------------- host-side weight packing ------------------------
# Fused-gate lane layout (width 8H): [ i | f | o | g ] blocks of width 2H,
# each block = [fwd (H lanes) | bwd (H lanes)].

def _split_gates(w, H):
    """(..., 4H) in PyTorch order (i,f,g,o) -> (..., 4, H) in (i,f,o,g)."""
    w4 = w.reshape(w.shape[:-1] + (4, H))
    return jnp.take(w4, jnp.asarray([0, 1, 3, 2]), axis=-2)


def _pack_ih(w_f, w_b, H, dtype):
    """(In,4H) fwd/bwd -> two (In,8H) matrices: 'a' routes the forward
    direction to the fwd lane-halves, 'b' the backward direction to the bwd
    lane-halves (zeros elsewhere)."""
    In = w_f.shape[0]
    wf4 = _split_gates(w_f, H)
    wb4 = _split_gates(w_b, H)
    z = jnp.zeros((In, 4, H), w_f.dtype)
    wa = jnp.stack([wf4, z], axis=2).reshape(In, 8 * H)
    wb = jnp.stack([z, wb4], axis=2).reshape(In, 8 * H)
    return wa.astype(dtype), wb.astype(dtype)


def _pack_hh(w_f, w_b, H, dtype):
    """(H,4H) fwd/bwd -> block-diagonal (2H,8H): rows [0:H) act on h_fwd,
    rows [H:2H) act on h_bwd."""
    wf4 = _split_gates(w_f, H)
    wb4 = _split_gates(w_b, H)
    z = jnp.zeros((H, 4, H), w_f.dtype)
    top = jnp.stack([wf4, z], axis=2).reshape(H, 8 * H)
    bot = jnp.stack([z, wb4], axis=2).reshape(H, 8 * H)
    return jnp.concatenate([top, bot], axis=0).astype(dtype)


def _pack_bias(b_f, b_b, H):
    """(1,4H) fwd/bwd (already b_ih + b_hh) -> (1,8H) fused layout, f32."""
    bf4 = _split_gates(b_f, H)
    bb4 = _split_gates(b_b, H)
    return jnp.stack([bf4, bb4], axis=2).reshape(1, 8 * H).astype(jnp.float32)


def make_dnn_pos_tagger(params, matmul_dtype=jnp.bfloat16):
    """Pack weights ONCE and return a jitted forward(word_idx) -> (T, K)."""
    H = params["w_hh_f0"].shape[0]
    K = params["b_out"].shape[-1]
    KP = max(128, ((K + 127) // 128) * 128)            # lane-dense classifier

    emb = params["embedding"].astype(matmul_dtype)
    wa0, wb0 = _pack_ih(params["w_ih_f0"], params["w_ih_b0"], H, matmul_dtype)
    whh0 = _pack_hh(params["w_hh_f0"], params["w_hh_b0"], H, matmul_dtype)
    b0 = _pack_bias(params["b_f0"], params["b_b0"], H)
    wa1, wb1 = _pack_ih(params["w_ih_f1"], params["w_ih_b1"], H, matmul_dtype)
    whh1 = _pack_hh(params["w_hh_f1"], params["w_hh_b1"], H, matmul_dtype)
    b1 = _pack_bias(params["b_f1"], params["b_b1"], H)
    # Classifier padded to KP lanes; padded logits get a -1e30 (f32) bias so
    # the row max / log-sum-exp over the real K columns is unchanged.
    w_out = (jnp.zeros((2 * H, KP), jnp.float32)
             .at[:, :K].set(params["w_out"]).astype(matmul_dtype))
    b_out = jnp.full((1, KP), -1e30, jnp.float32).at[:, :K].set(params["b_out"])

    weights = (wa0, wb0, whh0, b0, wa1, wb1, whh1, b1, w_out, b_out)

    @jax.jit
    def forward(word_idx):
        x = emb[word_idx[0]]                           # (T, E) gather = glue
        T = x.shape[0]
        vmem = pl.BlockSpec(memory_space=pltpu.MemorySpace.VMEM)
        out = pl.pallas_call(
            _make_tagger_kernel(T, H),
            out_shape=jax.ShapeDtypeStruct((T, KP), jnp.float32),
            in_specs=[vmem] * (1 + len(weights)),
            out_specs=vmem,
            scratch_shapes=[
                pltpu.VMEM((T, 8 * H), jnp.float32),   # gxa: fwd-lane gates+b
                pltpu.VMEM((T, 8 * H), jnp.float32),   # gxb: bwd-lane gates
                pltpu.VMEM((T, 2 * H), jnp.float32),   # layer-0 bi-output
                pltpu.VMEM((T, 2 * H), jnp.float32),   # layer-1 bi-output
            ],
            compiler_params=pltpu.CompilerParams(
                vmem_limit_bytes=32 * 1024 * 1024),
        )(x, *weights)
        return out[:, :K]

    return forward


# --------------------------- pure-JAX reference --------------------------

def _reference_forward(word_idx, params):
    x = params["embedding"][word_idx[0]]               # (T, E), f32
    H = params["w_hh_f0"].shape[0]

    def lstm_dir(x_seq, w_ih, w_hh, b):
        def step(carry, xt):
            h, c = carry
            g = xt @ w_ih + h @ w_hh + b[0]
            i = jax.nn.sigmoid(g[0:H])
            f = jax.nn.sigmoid(g[H:2 * H])
            gg = jnp.tanh(g[2 * H:3 * H])
            o = jax.nn.sigmoid(g[3 * H:4 * H])
            c = f * c + i * gg
            h = o * jnp.tanh(c)
            return (h, c), h
        init = (jnp.zeros(H, jnp.float32), jnp.zeros(H, jnp.float32))
        _, hs = jax.lax.scan(step, init, x_seq)
        return hs

    def bilstm(x_in, l):
        hf = lstm_dir(x_in, params[f"w_ih_f{l}"], params[f"w_hh_f{l}"],
                      params[f"b_f{l}"])
        hb = lstm_dir(x_in[::-1], params[f"w_ih_b{l}"], params[f"w_hh_b{l}"],
                      params[f"b_b{l}"])[::-1]
        return jnp.concatenate([hf, hb], axis=1)

    l1 = bilstm(bilstm(x, 0), 1)
    tag = l1 @ params["w_out"] + params["b_out"][0]
    return jax.nn.log_softmax(tag, axis=1)


# --------------------------------- demo ----------------------------------

if __name__ == "__main__":
    T, E, H = 8, 32, 32          # seq_len, emb_dim, hidden_dim
    WORD_VOCAB, TAG_VOCAB = 64, 16

    key = jax.random.PRNGKey(0)
    keys = jax.random.split(key, 16)

    def u(k, shape, s=0.1):
        return jax.random.uniform(k, shape, jnp.float32, -s, s)

    params = {
        "embedding": u(keys[0], (WORD_VOCAB, E), 1.0),
        # LSTM layer 0 (input size E), forward / backward directions.
        "w_ih_f0": u(keys[1], (E, 4 * H)),
        "w_hh_f0": u(keys[2], (H, 4 * H)),
        "b_f0":    u(keys[3], (1, 4 * H)),      # b_ih + b_hh folded together
        "w_ih_b0": u(keys[4], (E, 4 * H)),
        "w_hh_b0": u(keys[5], (H, 4 * H)),
        "b_b0":    u(keys[6], (1, 4 * H)),
        # LSTM layer 1 (input size 2H), forward / backward directions.
        "w_ih_f1": u(keys[7], (2 * H, 4 * H)),
        "w_hh_f1": u(keys[8], (H, 4 * H)),
        "b_f1":    u(keys[9], (1, 4 * H)),
        "w_ih_b1": u(keys[10], (2 * H, 4 * H)),
        "w_hh_b1": u(keys[11], (H, 4 * H)),
        "b_b1":    u(keys[12], (1, 4 * H)),
        # hidden2tag Linear(2H -> tag_vocab), stored transposed.
        "w_out":   u(keys[13], (2 * H, TAG_VOCAB)),
        "b_out":   u(keys[14], (1, TAG_VOCAB)),
    }

    word_idx = jax.random.randint(keys[15], (1, T), 0, WORD_VOCAB,
                                  dtype=jnp.int32)

    forward = make_dnn_pos_tagger(params)      # packs weights once
    out = forward(word_idx)
    jax.block_until_ready(out)
    assert out.shape == (T, TAG_VOCAB)

    ref = _reference_forward(word_idx, params)
    err = float(jnp.max(jnp.abs(out - ref)))
    assert err < 5e-2, f"max abs diff vs reference = {err}"

    print("KERNEL_OK")
</pallas_src>

<mosaic_0001>
module attributes {stable_mosaic.version = 11 : i64} {
  func.func @kernel(%arg0: memref<8x32xbf16, #tpu.memory_space<vmem>>, %arg1: memref<32x256xbf16, #tpu.memory_space<vmem>>, %arg2: memref<32x256xbf16, #tpu.memory_space<vmem>>, %arg3: memref<64x256xbf16, #tpu.memory_space<vmem>>, %arg4: memref<1x256xf32, #tpu.memory_space<vmem>>, %arg5: memref<64x256xbf16, #tpu.memory_space<vmem>>, %arg6: memref<64x256xbf16, #tpu.memory_space<vmem>>, %arg7: memref<64x256xbf16, #tpu.memory_space<vmem>>, %arg8: memref<1x256xf32, #tpu.memory_space<vmem>>, %arg9: memref<64x128xbf16, #tpu.memory_space<vmem>>, %arg10: memref<1x128xf32, #tpu.memory_space<vmem>>, %arg11: memref<8x128xf32, #tpu.memory_space<vmem>>, %arg12: memref<8x256xf32, #tpu.memory_space<vmem>>, %arg13: memref<8x256xf32, #tpu.memory_space<vmem>>, %arg14: memref<8x64xf32, #tpu.memory_space<vmem>>, %arg15: memref<8x64xf32, #tpu.memory_space<vmem>>) attributes {dimension_semantics = [], scalar_prefetch = 0 : i64, scratch_operands = 4 : i64, tpu.core_type = #tpu.core_type<tc>} {
    %c0 = arith.constant 0 : index
    %c0_0 = arith.constant 0 : index
    %0 = vector.load %arg0[%c0, %c0_0] : memref<8x32xbf16, #tpu.memory_space<vmem>>, vector<8x32xbf16>
    %c0_1 = arith.constant 0 : index
    %c0_2 = arith.constant 0 : index
    %1 = vector.load %arg1[%c0_1, %c0_2] : memref<32x256xbf16, #tpu.memory_space<vmem>>, vector<32x256xbf16>
    %cst = arith.constant dense<0.000000e+00> : vector<8x256xf32>
    %2 = tpu.matmul %0, %1, %cst {dimension_numbers = #tpu.dot_dimension_numbers<[1], [0], [0], [1], [0, 0, 1, 1], [], []>} : vector<8x32xbf16>, vector<32x256xbf16>, vector<8x256xf32> -> vector<8x256xf32>
    %c0_3 = arith.constant 0 : index
    %c0_4 = arith.constant 0 : index
    %3 = vector.load %arg4[%c0_3, %c0_4] : memref<1x256xf32, #tpu.memory_space<vmem>>, vector<1x256xf32>
    %4 = vector.broadcast %3 : vector<1x256xf32> to vector<8x256xf32>
    %5 = arith.addf %2, %4 : vector<8x256xf32>
    %c0_5 = arith.constant 0 : index
    %c0_6 = arith.constant 0 : index
    %6 = vector.load %arg12[%c0_5, %c0_6] : memref<8x256xf32, #tpu.memory_space<vmem>>, vector<8x256xf32>
    tpu.vector_store %arg12[%c0_5, %c0_6], %5 {strides = array<i32>} : memref<8x256xf32, #tpu.memory_space<vmem>>, vector<8x256xf32>,
    %c0_7 = arith.constant 0 : index
    %c0_8 = arith.constant 0 : index
    %7 = vector.load %arg2[%c0_7, %c0_8] : memref<32x256xbf16, #tpu.memory_space<vmem>>, vector<32x256xbf16>
    %cst_9 = arith.constant dense<0.000000e+00> : vector<8x256xf32>
    %8 = tpu.matmul %0, %7, %cst_9 {dimension_numbers = #tpu.dot_dimension_numbers<[1], [0], [0], [1], [0, 0, 1, 1], [], []>} : vector<8x32xbf16>, vector<32x256xbf16>, vector<8x256xf32> -> vector<8x256xf32>
    %c0_10 = arith.constant 0 : index
    %c0_11 = arith.constant 0 : index
    %9 = vector.load %arg13[%c0_10, %c0_11] : memref<8x256xf32, #tpu.memory_space<vmem>>, vector<8x256xf32>
    tpu.vector_store %arg13[%c0_10, %c0_11], %8 {strides = array<i32>} : memref<8x256xf32, #tpu.memory_space<vmem>>, vector<8x256xf32>,
    %c0_12 = arith.constant 0 : index
    %c0_13 = arith.constant 0 : index
    %10 = vector.load %arg3[%c0_12, %c0_13] : memref<64x256xbf16, #tpu.memory_space<vmem>>, vector<64x256xbf16>
    %cst_14 = arith.constant 0.000000e+00 : f32
    %11 = vector.broadcast %cst_14 : f32 to vector<1x64xf32>
    %c0_i32 = arith.constant 0 : i32
    %12 = arith.index_cast %c0_i32 : i32 to index
    %c0_15 = arith.constant 0 : index
    %13 = vector.load %arg12[%12, %c0_15] : memref<8x256xf32, #tpu.memory_space<vmem>>, vector<1x256xf32>
    %c7_i32 = arith.constant 7 : i32
    %14 = arith.subi %c7_i32, %c0_i32 : i32
    %15 = arith.index_cast %14 : i32 to index
    %c0_16 = arith.constant 0 : index
    %16 = vector.load %arg13[%15, %c0_16] : memref<8x256xf32, #tpu.memory_space<vmem>>, vector<1x256xf32>
    %17 = arith.addf %13, %16 : vector<1x256xf32>
    %18 = arith.truncf %11 : vector<1x64xf32> to vector<1x64xbf16>
    %cst_17 = arith.constant dense<0.000000e+00> : vector<1x256xf32>
    %19 = tpu.matmul %18, %10, %cst_17 {dimension_numbers = #tpu.dot_dimension_numbers<[1], [0], [0], [1], [0, 0, 1, 1], [], []>} : vector<1x64xbf16>, vector<64x256xbf16>, vector<1x256xf32> -> vector<1x256xf32>
    %20 = arith.addf %17, %19 : vector<1x256xf32>
    %21 = vector.extract_strided_slice %20 {offsets = [0, 0], sizes = [1, 192], strides = [1, 1]} : vector<1x256xf32> to vector<1x192xf32>
    %22 = arith.negf %21 : vector<1x192xf32>
    %23 = math.exp %22 : vector<1x192xf32>
    %cst_18 = arith.constant 1.000000e+00 : f32
    %24 = vector.broadcast %cst_18 : f32 to vector<1x192xf32>
    %25 = arith.addf %24, %23 : vector<1x192xf32>
    %26 = arith.divf %24, %25 : vector<1x192xf32>
    %27 = vector.extract_strided_slice %20 {offsets = [0, 192], sizes = [1, 64], strides = [1, 1]} : vector<1x256xf32> to vector<1x64xf32>
    %28 = math.tanh %27 : vector<1x64xf32>
    %29 = vector.extract_strided_slice %26 {offsets = [0, 0], sizes = [1, 64], strides = [1, 1]} : vector<1x192xf32> to vector<1x64xf32>
    %30 = vector.extract_strided_slice %26 {offsets = [0, 64], sizes = [1, 64], strides = [1, 1]} : vector<1x192xf32> to vector<1x64xf32>
    %31 = vector.extract_strided_slice %26 {offsets = [0, 128], sizes = [1, 64], strides = [1, 1]} : vector<1x192xf32> to vector<1x64xf32>
    %32 = arith.mulf %30, %11 : vector<1x64xf32>
    %33 = arith.mulf %29, %28 : vector<1x64xf32>
    %34 = arith.addf %32, %33 : vector<1x64xf32>
    %35 = math.tanh %34 : vector<1x64xf32>
    %36 = arith.mulf %31, %35 : vector<1x64xf32>
    %37 = vector.extract_strided_slice %36 {offsets = [0, 0], sizes = [1, 32], strides = [1, 1]} : vector<1x64xf32> to vector<1x32xf32>
    %38 = arith.index_cast %c0_i32 : i32 to index
    %c0_19 = arith.constant 0 : index
    %39 = vector.load %arg14[%38, %c0_19] : memref<8x64xf32, #tpu.memory_space<vmem>>, vector<1x32xf32>
    tpu.vector_store %arg14[%38, %c0_19], %37 {strides = array<i32>} : memref<8x64xf32, #tpu.memory_space<vmem>>, vector<1x32xf32>,
    %40 = vector.extract_strided_slice %36 {offsets = [0, 32], sizes = [1, 32], strides = [1, 1]} : vector<1x64xf32> to vector<1x32xf32>
    %c7_i32_20 = arith.constant 7 : i32
    %41 = arith.subi %c7_i32_20, %c0_i32 : i32
    %42 = arith.index_cast %41 : i32 to index
    %c32 = arith.constant 32 : index
    %43 = vector.load %arg14[%42, %c32] : memref<8x64xf32, #tpu.memory_space<vmem>>, vector<1x32xf32>
    tpu.vector_store %arg14[%42, %c32], %40 {strides = array<i32>} : memref<8x64xf32, #tpu.memory_space<vmem>>, vector<1x32xf32>,
    %c1_i32 = arith.constant 1 : i32
    %44 = arith.index_cast %c1_i32 : i32 to index
    %c0_21 = arith.constant 0 : index
    %45 = vector.load %arg12[%44, %c0_21] : memref<8x256xf32, #tpu.memory_space<vmem>>, vector<1x256xf32>
    %c7_i32_22 = arith.constant 7 : i32
    %46 = arith.subi %c7_i32_22, %c1_i32 : i32
    %47 = arith.index_cast %46 : i32 to index
    %c0_23 = arith.constant 0 : index
    %48 = vector.load %arg13[%47, %c0_23] : memref<8x256xf32, #tpu.memory_space<vmem>>, vector<1x256xf32>
    %49 = arith.addf %45, %48 : vector<1x256xf32>
    %50 = arith.truncf %36 : vector<1x64xf32> to vector<1x64xbf16>
    %cst_24 = arith.constant dense<0.000000e+00> : vector<1x256xf32>
    %51 = tpu.matmul %50, %10, %cst_24 {dimension_numbers = #tpu.dot_dimension_numbers<[1], [0], [0], [1], [0, 0, 1, 1], [], []>} : vector<1x64xbf16>, vector<64x256xbf16>, vector<1x256xf32> -> vector<1x256xf32>
    %52 = arith.addf %49, %51 : vector<1x256xf32>
    %53 = vector.extract_strided_slice %52 {offsets = [0, 0], sizes = [1, 192], strides = [1, 1]} : vector<1x256xf32> to vector<1x192xf32>
    %54 = arith.negf %53 : vector<1x192xf32>
    %55 = math.exp %54 : vector<1x192xf32>
    %cst_25 = arith.constant 1.000000e+00 : f32
    %56 = vector.broadcast %cst_25 : f32 to vector<1x192xf32>
    %57 = arith.addf %56, %55 : vector<1x192xf32>
    %58 = arith.divf %56, %57 : vector<1x192xf32>
    %59 = vector.extract_strided_slice %52 {offsets = [0, 192], sizes = [1, 64], strides = [1, 1]} : vector<1x256xf32> to vector<1x64xf32>
    %60 = math.tanh %59 : vector<1x64xf32>
    %61 = vector.extract_strided_slice %58 {offsets = [0, 0], sizes = [1, 64], strides = [1, 1]} : vector<1x192xf32> to vector<1x64xf32>
    %62 = vector.extract_strided_slice %58 {offsets = [0, 64], sizes = [1, 64], strides = [1, 1]} : vector<1x192xf32> to vector<1x64xf32>
    %63 = vector.extract_strided_slice %58 {offsets = [0, 128], sizes = [1, 64], strides = [1, 1]} : vector<1x192xf32> to vector<1x64xf32>
    %64 = arith.mulf %62, %34 : vector<1x64xf32>
    %65 = arith.mulf %61, %60 : vector<1x64xf32>
    %66 = arith.addf %64, %65 : vector<1x64xf32>
    %67 = math.tanh %66 : vector<1x64xf32>
    %68 = arith.mulf %63, %67 : vector<1x64xf32>
    %69 = vector.extract_strided_slice %68 {offsets = [0, 0], sizes = [1, 32], strides = [1, 1]} : vector<1x64xf32> to vector<1x32xf32>
    %70 = arith.index_cast %c1_i32 : i32 to index
    %c0_26 = arith.constant 0 : index
    %71 = vector.load %arg14[%70, %c0_26] : memref<8x64xf32, #tpu.memory_space<vmem>>, vector<1x32xf32>
    tpu.vector_store %arg14[%70, %c0_26], %69 {strides = array<i32>} : memref<8x64xf32, #tpu.memory_space<vmem>>, vector<1x32xf32>,
    %72 = vector.extract_strided_slice %68 {offsets = [0, 32], sizes = [1, 32], strides = [1, 1]} : vector<1x64xf32> to vector<1x32xf32>
    %c7_i32_27 = arith.constant 7 : i32
    %73 = arith.subi %c7_i32_27, %c1_i32 : i32
    %74 = arith.index_cast %73 : i32 to index
    %c32_28 = arith.constant 32 : index
    %75 = vector.load %arg14[%74, %c32_28] : memref<8x64xf32, #tpu.memory_space<vmem>>, vector<1x32xf32>
    tpu.vector_store %arg14[%74, %c32_28], %72 {strides = array<i32>} : memref<8x64xf32, #tpu.memory_space<vmem>>, vector<1x32xf32>,
    %c2_i32 = arith.constant 2 : i32
    %76 = arith.index_cast %c2_i32 : i32 to index
    %c0_29 = arith.constant 0 : index
    %77 = vector.load %arg12[%76, %c0_29] : memref<8x256xf32, #tpu.memory_space<vmem>>, vector<1x256xf32>
    %c7_i32_30 = arith.constant 7 : i32
    %78 = arith.subi %c7_i32_30, %c2_i32 : i32
    %79 = arith.index_cast %78 : i32 to index
    %c0_31 = arith.constant 0 : index
    %80 = vector.load %arg13[%79, %c0_31] : memref<8x256xf32, #tpu.memory_space<vmem>>, vector<1x256xf32>
    %81 = arith.addf %77, %80 : vector<1x256xf32>
    %82 = arith.truncf %68 : vector<1x64xf32> to vector<1x64xbf16>
    %cst_32 = arith.constant dense<0.000000e+00> : vector<1x256xf32>
    %83 = tpu.matmul %82, %10, %cst_32 {dimension_numbers = #tpu.dot_dimension_numbers<[1], [0], [0], [1], [0, 0, 1, 1], [], []>} : vector<1x64xbf16>, vector<64x256xbf16>, vector<1x256xf32> -> vector<1x256xf32>
    %84 = arith.addf %81, %83 : vector<1x256xf32>
    %85 = vector.extract_strided_slice %84 {offsets = [0, 0], sizes = [1, 192], strides = [1, 1]} : vector<1x256xf32> to vector<1x192xf32>
    %86 = arith.negf %85 : vector<1x192xf32>
    %87 = math.exp %86 : vector<1x192xf32>
    %cst_33 = arith.constant 1.000000e+00 : f32
    %88 = vector.broadcast %cst_33 : f32 to vector<1x192xf32>
    %89 = arith.addf %88, %87 : vector<1x192xf32>
    %90 = arith.divf %88, %89 : vector<1x192xf32>
    %91 = vector.extract_strided_slice %84 {offsets = [0, 192], sizes = [1, 64], strides = [1, 1]} : vector<1x256xf32> to vector<1x64xf32>
    %92 = math.tanh %91 : vector<1x64xf32>
    %93 = vector.extract_strided_slice %90 {offsets = [0, 0], sizes = [1, 64], strides = [1, 1]} : vector<1x192xf32> to vector<1x64xf32>
    %94 = vector.extract_strided_slice %90 {offsets = [0, 64], sizes = [1, 64], strides = [1, 1]} : vector<1x192xf32> to vector<1x64xf32>
    %95 = vector.extract_strided_slice %90 {offsets = [0, 128], sizes = [1, 64], strides = [1, 1]} : vector<1x192xf32> to vector<1x64xf32>
    %96 = arith.mulf %94, %66 : vector<1x64xf32>
    %97 = arith.mulf %93, %92 : vector<1x64xf32>
    %98 = arith.addf %96, %97 : vector<1x64xf32>
    %99 = math.tanh %98 : vector<1x64xf32>
    %100 = arith.mulf %95, %99 : vector<1x64xf32>
    %101 = vector.extract_strided_slice %100 {offsets = [0, 0], sizes = [1, 32], strides = [1, 1]} : vector<1x64xf32> to vector<1x32xf32>
    %102 = arith.index_cast %c2_i32 : i32 to index
    %c0_34 = arith.constant 0 : index
    %103 = vector.load %arg14[%102, %c0_34] : memref<8x64xf32, #tpu.memory_space<vmem>>, vector<1x32xf32>
    tpu.vector_store %arg14[%102, %c0_34], %101 {strides = array<i32>} : memref<8x64xf32, #tpu.memory_space<vmem>>, vector<1x32xf32>,
    %104 = vector.extract_strided_slice %100 {offsets = [0, 32], sizes = [1, 32], strides = [1, 1]} : vector<1x64xf32> to vector<1x32xf32>
    %c7_i32_35 = arith.constant 7 : i32
    %105 = arith.subi %c7_i32_35, %c2_i32 : i32
    %106 = arith.index_cast %105 : i32 to index
    %c32_36 = arith.constant 32 : index
    %107 = vector.load %arg14[%106, %c32_36] : memref<8x64xf32, #tpu.memory_space<vmem>>, vector<1x32xf32>
    tpu.vector_store %arg14[%106, %c32_36], %104 {strides = array<i32>} : memref<8x64xf32, #tpu.memory_space<vmem>>, vector<1x32xf32>,
    %c3_i32 = arith.constant 3 : i32
    %108 = arith.index_cast %c3_i32 : i32 to index
    %c0_37 = arith.constant 0 : index
    %109 = vector.load %arg12[%108, %c0_37] : memref<8x256xf32, #tpu.memory_space<vmem>>, vector<1x256xf32>
    %c7_i32_38 = arith.constant 7 : i32
    %110 = arith.subi %c7_i32_38, %c3_i32 : i32
    %111 = arith.index_cast %110 : i32 to index
    %c0_39 = arith.constant 0 : index
    %112 = vector.load %arg13[%111, %c0_39] : memref<8x256xf32, #tpu.memory_space<vmem>>, vector<1x256xf32>
    %113 = arith.addf %109, %112 : vector<1x256xf32>
    %114 = arith.truncf %100 : vector<1x64xf32> to vector<1x64xbf16>
    %cst_40 = arith.constant dense<0.000000e+00> : vector<1x256xf32>
    %115 = tpu.matmul %114, %10, %cst_40 {dimension_numbers = #tpu.dot_dimension_numbers<[1], [0], [0], [1], [0, 0, 1, 1], [], []>} : vector<1x64xbf16>, vector<64x256xbf16>, vector<1x256xf32> -> vector<1x256xf32>
    %116 = arith.addf %113, %115 : vector<1x256xf32>
    %117 = vector.extract_strided_slice %116 {offsets = [0, 0], sizes = [1, 192], strides = [1, 1]} : vector<1x256xf32> to vector<1x192xf32>
    %118 = arith.negf %117 : vector<1x192xf32>
    %119 = math.exp %118 : vector<1x192xf32>
    %cst_41 = arith.constant 1.000000e+00 : f32
    %120 = vector.broadcast %cst_41 : f32 to vector<1x192xf32>
    %121 = arith.addf %120, %119 : vector<1x192xf32>
    %122 = arith.divf %120, %121 : vector<1x192xf32>
    %123 = vector.extract_strided_slice %116 {offsets = [0, 192], sizes = [1, 64], strides = [1, 1]} : vector<1x256xf32> to vector<1x64xf32>
    %124 = math.tanh %123 : vector<1x64xf32>
    %125 = vector.extract_strided_slice %122 {offsets = [0, 0], sizes = [1, 64], strides = [1, 1]} : vector<1x192xf32> to vector<1x64xf32>
    %126 = vector.extract_strided_slice %122 {offsets = [0, 64], sizes = [1, 64], strides = [1, 1]} : vector<1x192xf32> to vector<1x64xf32>
    %127 = vector.extract_strided_slice %122 {offsets = [0, 128], sizes = [1, 64], strides = [1, 1]} : vector<1x192xf32> to vector<1x64xf32>
    %128 = arith.mulf %126, %98 : vector<1x64xf32>
    %129 = arith.mulf %125, %124 : vector<1x64xf32>
    %130 = arith.addf %128, %129 : vector<1x64xf32>
    %131 = math.tanh %130 : vector<1x64xf32>
    %132 = arith.mulf %127, %131 : vector<1x64xf32>
    %133 = vector.extract_strided_slice %132 {offsets = [0, 0], sizes = [1, 32], strides = [1, 1]} : vector<1x64xf32> to vector<1x32xf32>
    %134 = arith.index_cast %c3_i32 : i32 to index
    %c0_42 = arith.constant 0 : index
    %135 = vector.load %arg14[%134, %c0_42] : memref<8x64xf32, #tpu.memory_space<vmem>>, vector<1x32xf32>
    tpu.vector_store %arg14[%134, %c0_42], %133 {strides = array<i32>} : memref<8x64xf32, #tpu.memory_space<vmem>>, vector<1x32xf32>,
    %136 = vector.extract_strided_slice %132 {offsets = [0, 32], sizes = [1, 32], strides = [1, 1]} : vector<1x64xf32> to vector<1x32xf32>
    %c7_i32_43 = arith.constant 7 : i32
    %137 = arith.subi %c7_i32_43, %c3_i32 : i32
    %138 = arith.index_cast %137 : i32 to index
    %c32_44 = arith.constant 32 : index
    %139 = vector.load %arg14[%138, %c32_44] : memref<8x64xf32, #tpu.memory_space<vmem>>, vector<1x32xf32>
    tpu.vector_store %arg14[%138, %c32_44], %136 {strides = array<i32>} : memref<8x64xf32, #tpu.memory_space<vmem>>, vector<1x32xf32>,
    %c4_i32 = arith.constant 4 : i32
    %140 = arith.index_cast %c4_i32 : i32 to index
    %c0_45 = arith.constant 0 : index
    %141 = vector.load %arg12[%140, %c0_45] : memref<8x256xf32, #tpu.memory_space<vmem>>, vector<1x256xf32>
    %c7_i32_46 = arith.constant 7 : i32
    %142 = arith.subi %c7_i32_46, %c4_i32 : i32
    %143 = arith.index_cast %142 : i32 to index
    %c0_47 = arith.constant 0 : index
    %144 = vector.load %arg13[%143, %c0_47] : memref<8x256xf32, #tpu.memory_space<vmem>>, vector<1x256xf32>
    %145 = arith.addf %141, %144 : vector<1x256xf32>
    %146 = arith.truncf %132 : vector<1x64xf32> to vector<1x64xbf16>
    %cst_48 = arith.constant dense<0.000000e+00> : vector<1x256xf32>
    %147 = tpu.matmul %146, %10, %cst_48 {dimension_numbers = #tpu.dot_dimension_numbers<[1], [0], [0], [1], [0, 0, 1, 1], [], []>} : vector<1x64xbf16>, vector<64x256xbf16>, vector<1x256xf32> -> vector<1x256xf32>
    %148 = arith.addf %145, %147 : vector<1x256xf32>
    %149 = vector.extract_strided_slice %148 {offsets = [0, 0], sizes = [1, 192], strides = [1, 1]} : vector<1x256xf32> to vector<1x192xf32>
    %150 = arith.negf %149 : vector<1x192xf32>
    %151 = math.exp %150 : vector<1x192xf32>
    %cst_49 = arith.constant 1.000000e+00 : f32
    %152 = vector.broadcast %cst_49 : f32 to vector<1x192xf32>
    %153 = arith.addf %152, %151 : vector<1x192xf32>
    %154 = arith.divf %152, %153 : vector<1x192xf32>
    %155 = vector.extract_strided_slice %148 {offsets = [0, 192], sizes = [1, 64], strides = [1, 1]} : vector<1x256xf32> to vector<1x64xf32>
    %156 = math.tanh %155 : vector<1x64xf32>
    %157 = vector.extract_strided_slice %154 {offsets = [0, 0], sizes = [1, 64], strides = [1, 1]} : vector<1x192xf32> to vector<1x64xf32>
    %158 = vector.extract_strided_slice %154 {offsets = [0, 64], sizes = [1, 64], strides = [1, 1]} : vector<1x192xf32> to vector<1x64xf32>
    %159 = vector.extract_strided_slice %154 {offsets = [0, 128], sizes = [1, 64], strides = [1, 1]} : vector<1x192xf32> to vector<1x64xf32>
    %160 = arith.mulf %158, %130 : vector<1x64xf32>
    %161 = arith.mulf %157, %156 : vector<1x64xf32>
    %162 = arith.addf %160, %161 : vector<1x64xf32>
    %163 = math.tanh %162 : vector<1x64xf32>
    %164 = arith.mulf %159, %163 : vector<1x64xf32>
    %165 = vector.extract_strided_slice %164 {offsets = [0, 0], sizes = [1, 32], strides = [1, 1]} : vector<1x64xf32> to vector<1x32xf32>
    %166 = arith.index_cast %c4_i32 : i32 to index
    %c0_50 = arith.constant 0 : index
    %167 = vector.load %arg14[%166, %c0_50] : memref<8x64xf32, #tpu.memory_space<vmem>>, vector<1x32xf32>
    tpu.vector_store %arg14[%166, %c0_50], %165 {strides = array<i32>} : memref<8x64xf32, #tpu.memory_space<vmem>>, vector<1x32xf32>,
    %168 = vector.extract_strided_slice %164 {offsets = [0, 32], sizes = [1, 32], strides = [1, 1]} : vector<1x64xf32> to vector<1x32xf32>
    %c7_i32_51 = arith.constant 7 : i32
    %169 = arith.subi %c7_i32_51, %c4_i32 : i32
    %170 = arith.index_cast %169 : i32 to index
    %c32_52 = arith.constant 32 : index
    %171 = vector.load %arg14[%170, %c32_52] : memref<8x64xf32, #tpu.memory_space<vmem>>, vector<1x32xf32>
    tpu.vector_store %arg14[%170, %c32_52], %168 {strides = array<i32>} : memref<8x64xf32, #tpu.memory_space<vmem>>, vector<1x32xf32>,
    %c5_i32 = arith.constant 5 : i32
    %172 = arith.index_cast %c5_i32 : i32 to index
    %c0_53 = arith.constant 0 : index
    %173 = vector.load %arg12[%172, %c0_53] : memref<8x256xf32, #tpu.memory_space<vmem>>, vector<1x256xf32>
    %c7_i32_54 = arith.constant 7 : i32
    %174 = arith.subi %c7_i32_54, %c5_i32 : i32
    %175 = arith.index_cast %174 : i32 to index
    %c0_55 = arith.constant 0 : index
    %176 = vector.load %arg13[%175, %c0_55] : memref<8x256xf32, #tpu.memory_space<vmem>>, vector<1x256xf32>
    %177 = arith.addf %173, %176 : vector<1x256xf32>
    %178 = arith.truncf %164 : vector<1x64xf32> to vector<1x64xbf16>
    %cst_56 = arith.constant dense<0.000000e+00> : vector<1x256xf32>
    %179 = tpu.matmul %178, %10, %cst_56 {dimension_numbers = #tpu.dot_dimension_numbers<[1], [0], [0], [1], [0, 0, 1, 1], [], []>} : vector<1x64xbf16>, vector<64x256xbf16>, vector<1x256xf32> -> vector<1x256xf32>
    %180 = arith.addf %177, %179 : vector<1x256xf32>
    %181 = vector.extract_strided_slice %180 {offsets = [0, 0], sizes = [1, 192], strides = [1, 1]} : vector<1x256xf32> to vector<1x192xf32>
    %182 = arith.negf %181 : vector<1x192xf32>
    %183 = math.exp %182 : vector<1x192xf32>
    %cst_57 = arith.constant 1.000000e+00 : f32
    %184 = vector.broadcast %cst_57 : f32 to vector<1x192xf32>
    %185 = arith.addf %184, %183 : vector<1x192xf32>
    %186 = arith.divf %184, %185 : vector<1x192xf32>
    %187 = vector.extract_strided_slice %180 {offsets = [0, 192], sizes = [1, 64], strides = [1, 1]} : vector<1x256xf32> to vector<1x64xf32>
    %188 = math.tanh %187 : vector<1x64xf32>
    %189 = vector.extract_strided_slice %186 {offsets = [0, 0], sizes = [1, 64], strides = [1, 1]} : vector<1x192xf32> to vector<1x64xf32>
    %190 = vector.extract_strided_slice %186 {offsets = [0, 64], sizes = [1, 64], strides = [1, 1]} : vector<1x192xf32> to vector<1x64xf32>
    %191 = vector.extract_strided_slice %186 {offsets = [0, 128], sizes = [1, 64], strides = [1, 1]} : vector<1x192xf32> to vector<1x64xf32>
    %192 = arith.mulf %190, %162 : vector<1x64xf32>
    %193 = arith.mulf %189, %188 : vector<1x64xf32>
    %194 = arith.addf %192, %193 : vector<1x64xf32>
    %195 = math.tanh %194 : vector<1x64xf32>
    %196 = arith.mulf %191, %195 : vector<1x64xf32>
    %197 = vector.extract_strided_slice %196 {offsets = [0, 0], sizes = [1, 32], strides = [1, 1]} : vector<1x64xf32> to vector<1x32xf32>
    %198 = arith.index_cast %c5_i32 : i32 to index
    %c0_58 = arith.constant 0 : index
    %199 = vector.load %arg14[%198, %c0_58] : memref<8x64xf32, #tpu.memory_space<vmem>>, vector<1x32xf32>
    tpu.vector_store %arg14[%198, %c0_58], %197 {strides = array<i32>} : memref<8x64xf32, #tpu.memory_space<vmem>>, vector<1x32xf32>,
    %200 = vector.extract_strided_slice %196 {offsets = [0, 32], sizes = [1, 32], strides = [1, 1]} : vector<1x64xf32> to vector<1x32xf32>
    %c7_i32_59 = arith.constant 7 : i32
    %201 = arith.subi %c7_i32_59, %c5_i32 : i32
    %202 = arith.index_cast %201 : i32 to index
    %c32_60 = arith.constant 32 : index
    %203 = vector.load %arg14[%202, %c32_60] : memref<8x64xf32, #tpu.memory_space<vmem>>, vector<1x32xf32>
    tpu.vector_store %arg14[%202, %c32_60], %200 {strides = array<i32>} : memref<8x64xf32, #tpu.memory_space<vmem>>, vector<1x32xf32>,
    %c6_i32 = arith.constant 6 : i32
    %204 = arith.index_cast %c6_i32 : i32 to index
    %c0_61 = arith.constant 0 : index
    %205 = vector.load %arg12[%204, %c0_61] : memref<8x256xf32, #tpu.memory_space<vmem>>, vector<1x256xf32>
    %c7_i32_62 = arith.constant 7 : i32
    %206 = arith.subi %c7_i32_62, %c6_i32 : i32
    %207 = arith.index_cast %206 : i32 to index
    %c0_63 = arith.constant 0 : index
    %208 = vector.load %arg13[%207, %c0_63] : memref<8x256xf32, #tpu.memory_space<vmem>>, vector<1x256xf32>
    %209 = arith.addf %205, %208 : vector<1x256xf32>
    %210 = arith.truncf %196 : vector<1x64xf32> to vector<1x64xbf16>
    %cst_64 = arith.constant dense<0.000000e+00> : vector<1x256xf32>
    %211 = tpu.matmul %210, %10, %cst_64 {dimension_numbers = #tpu.dot_dimension_numbers<[1], [0], [0], [1], [0, 0, 1, 1], [], []>} : vector<1x64xbf16>, vector<64x256xbf16>, vector<1x256xf32> -> vector<1x256xf32>
    %212 = arith.addf %209, %211 : vector<1x256xf32>
    %213 = vector.extract_strided_slice %212 {offsets = [0, 0], sizes = [1, 192], strides = [1, 1]} : vector<1x256xf32> to vector<1x192xf32>
    %214 = arith.negf %213 : vector<1x192xf32>
    %215 = math.exp %214 : vector<1x192xf32>
    %cst_65 = arith.constant 1.000000e+00 : f32
    %216 = vector.broadcast %cst_65 : f32 to vector<1x192xf32>
    %217 = arith.addf %216, %215 : vector<1x192xf32>
    %218 = arith.divf %216, %217 : vector<1x192xf32>
    %219 = vector.extract_strided_slice %212 {offsets = [0, 192], sizes = [1, 64], strides = [1, 1]} : vector<1x256xf32> to vector<1x64xf32>
    %220 = math.tanh %219 : vector<1x64xf32>
    %221 = vector.extract_strided_slice %218 {offsets = [0, 0], sizes = [1, 64], strides = [1, 1]} : vector<1x192xf32> to vector<1x64xf32>
    %222 = vector.extract_strided_slice %218 {offsets = [0, 64], sizes = [1, 64], strides = [1, 1]} : vector<1x192xf32> to vector<1x64xf32>
    %223 = vector.extract_strided_slice %218 {offsets = [0, 128], sizes = [1, 64], strides = [1, 1]} : vector<1x192xf32> to vector<1x64xf32>
    %224 = arith.mulf %222, %194 : vector<1x64xf32>
    %225 = arith.mulf %221, %220 : vector<1x64xf32>
    %226 = arith.addf %224, %225 : vector<1x64xf32>
    %227 = math.tanh %226 : vector<1x64xf32>
    %228 = arith.mulf %223, %227 : vector<1x64xf32>
    %229 = vector.extract_strided_slice %228 {offsets = [0, 0], sizes = [1, 32], strides = [1, 1]} : vector<1x64xf32> to vector<1x32xf32>
    %230 = arith.index_cast %c6_i32 : i32 to index
    %c0_66 = arith.constant 0 : index
    %231 = vector.load %arg14[%230, %c0_66] : memref<8x64xf32, #tpu.memory_space<vmem>>, vector<1x32xf32>
    tpu.vector_store %arg14[%230, %c0_66], %229 {strides = array<i32>} : memref<8x64xf32, #tpu.memory_space<vmem>>, vector<1x32xf32>,
    %232 = vector.extract_strided_slice %228 {offsets = [0, 32], sizes = [1, 32], strides = [1, 1]} : vector<1x64xf32> to vector<1x32xf32>
    %c7_i32_67 = arith.constant 7 : i32
    %233 = arith.subi %c7_i32_67, %c6_i32 : i32
    %234 = arith.index_cast %233 : i32 to index
    %c32_68 = arith.constant 32 : index
    %235 = vector.load %arg14[%234, %c32_68] : memref<8x64xf32, #tpu.memory_space<vmem>>, vector<1x32xf32>
    tpu.vector_store %arg14[%234, %c32_68], %232 {strides = array<i32>} : memref<8x64xf32, #tpu.memory_space<vmem>>, vector<1x32xf32>,
    %c7_i32_69 = arith.constant 7 : i32
    %236 = arith.index_cast %c7_i32_69 : i32 to index
    %c0_70 = arith.constant 0 : index
    %237 = vector.load %arg12[%236, %c0_70] : memref<8x256xf32, #tpu.memory_space<vmem>>, vector<1x256xf32>
    %c7_i32_71 = arith.constant 7 : i32
    %238 = arith.subi %c7_i32_71, %c7_i32_69 : i32
    %239 = arith.index_cast %238 : i32 to index
    %c0_72 = arith.constant 0 : index
    %240 = vector.load %arg13[%239, %c0_72] : memref<8x256xf32, #tpu.memory_space<vmem>>, vector<1x256xf32>
    %241 = arith.addf %237, %240 : vector<1x256xf32>
    %242 = arith.truncf %228 : vector<1x64xf32> to vector<1x64xbf16>
    %cst_73 = arith.constant dense<0.000000e+00> : vector<1x256xf32>
    %243 = tpu.matmul %242, %10, %cst_73 {dimension_numbers = #tpu.dot_dimension_numbers<[1], [0], [0], [1], [0, 0, 1, 1], [], []>} : vector<1x64xbf16>, vector<64x256xbf16>, vector<1x256xf32> -> vector<1x256xf32>
    %244 = arith.addf %241, %243 : vector<1x256xf32>
    %245 = vector.extract_strided_slice %244 {offsets = [0, 0], sizes = [1, 192], strides = [1, 1]} : vector<1x256xf32> to vector<1x192xf32>
    %246 = arith.negf %245 : vector<1x192xf32>
    %247 = math.exp %246 : vector<1x192xf32>
    %cst_74 = arith.constant 1.000000e+00 : f32
    %248 = vector.broadcast %cst_74 : f32 to vector<1x192xf32>
    %249 = arith.addf %248, %247 : vector<1x192xf32>
    %250 = arith.divf %248, %249 : vector<1x192xf32>
    %251 = vector.extract_strided_slice %244 {offsets = [0, 192], sizes = [1, 64], strides = [1, 1]} : vector<1x256xf32> to vector<1x64xf32>
    %252 = math.tanh %251 : vector<1x64xf32>
    %253 = vector.extract_strided_slice %250 {offsets = [0, 0], sizes = [1, 64], strides = [1, 1]} : vector<1x192xf32> to vector<1x64xf32>
    %254 = vector.extract_strided_slice %250 {offsets = [0, 64], sizes = [1, 64], strides = [1, 1]} : vector<1x192xf32> to vector<1x64xf32>
    %255 = vector.extract_strided_slice %250 {offsets = [0, 128], sizes = [1, 64], strides = [1, 1]} : vector<1x192xf32> to vector<1x64xf32>
    %256 = arith.mulf %254, %226 : vector<1x64xf32>
    %257 = arith.mulf %253, %252 : vector<1x64xf32>
    %258 = arith.addf %256, %257 : vector<1x64xf32>
    %259 = math.tanh %258 : vector<1x64xf32>
    %260 = arith.mulf %255, %259 : vector<1x64xf32>
    %261 = vector.extract_strided_slice %260 {offsets = [0, 0], sizes = [1, 32], strides = [1, 1]} : vector<1x64xf32> to vector<1x32xf32>
    %262 = arith.index_cast %c7_i32_69 : i32 to index
    %c0_75 = arith.constant 0 : index
    %263 = vector.load %arg14[%262, %c0_75] : memref<8x64xf32, #tpu.memory_space<vmem>>, vector<1x32xf32>
    tpu.vector_store %arg14[%262, %c0_75], %261 {strides = array<i32>} : memref<8x64xf32, #tpu.memory_space<vmem>>, vector<1x32xf32>,
    %264 = vector.extract_strided_slice %260 {offsets = [0, 32], sizes = [1, 32], strides = [1, 1]} : vector<1x64xf32> to vector<1x32xf32>
    %c7_i32_76 = arith.constant 7 : i32
    %265 = arith.subi %c7_i32_76, %c7_i32_69 : i32
    %266 = arith.index_cast %265 : i32 to index
    %c32_77 = arith.constant 32 : index
    %267 = vector.load %arg14[%266, %c32_77] : memref<8x64xf32, #tpu.memory_space<vmem>>, vector<1x32xf32>
    tpu.vector_store %arg14[%266, %c32_77], %264 {strides = array<i32>} : memref<8x64xf32, #tpu.memory_space<vmem>>, vector<1x32xf32>,
    %c8_i32 = arith.constant 8 : i32
    %c0_78 = arith.constant 0 : index
    %c0_79 = arith.constant 0 : index
    %268 = vector.load %arg14[%c0_78, %c0_79] : memref<8x64xf32, #tpu.memory_space<vmem>>, vector<8x64xf32>
    %269 = arith.truncf %268 : vector<8x64xf32> to vector<8x64xbf16>
    %c0_80 = arith.constant 0 : index
    %c0_81 = arith.constant 0 : index
    %270 = vector.load %arg5[%c0_80, %c0_81] : memref<64x256xbf16, #tpu.memory_space<vmem>>, vector<64x256xbf16>
    %cst_82 = arith.constant dense<0.000000e+00> : vector<8x256xf32>
    %271 = tpu.matmul %269, %270, %cst_82 {dimension_numbers = #tpu.dot_dimension_numbers<[1], [0], [0], [1], [0, 0, 1, 1], [], []>} : vector<8x64xbf16>, vector<64x256xbf16>, vector<8x256xf32> -> vector<8x256xf32>
    %c0_83 = arith.constant 0 : index
    %c0_84 = arith.constant 0 : index
    %272 = vector.load %arg8[%c0_83, %c0_84] : memref<1x256xf32, #tpu.memory_space<vmem>>, vector<1x256xf32>
    %273 = vector.broadcast %272 : vector<1x256xf32> to vector<8x256xf32>
    %274 = arith.addf %271, %273 : vector<8x256xf32>
    %c0_85 = arith.constant 0 : index
    %c0_86 = arith.constant 0 : index
    %275 = vector.load %arg12[%c0_85, %c0_86] : memref<8x256xf32, #tpu.memory_space<vmem>>, vector<8x256xf32>
    tpu.vector_store %arg12[%c0_85, %c0_86], %274 {strides = array<i32>} : memref<8x256xf32, #tpu.memory_space<vmem>>, vector<8x256xf32>,
    %c0_87 = arith.constant 0 : index
    %c0_88 = arith.constant 0 : index
    %276 = vector.load %arg6[%c0_87, %c0_88] : memref<64x256xbf16, #tpu.memory_space<vmem>>, vector<64x256xbf16>
    %cst_89 = arith.constant dense<0.000000e+00> : vector<8x256xf32>
    %277 = tpu.matmul %269, %276, %cst_89 {dimension_numbers = #tpu.dot_dimension_numbers<[1], [0], [0], [1], [0, 0, 1, 1], [], []>} : vector<8x64xbf16>, vector<64x256xbf16>, vector<8x256xf32> -> vector<8x256xf32>
    %c0_90 = arith.constant 0 : index
    %c0_91 = arith.constant 0 : index
    %278 = vector.load %arg13[%c0_90, %c0_91] : memref<8x256xf32, #tpu.memory_space<vmem>>, vector<8x256xf32>
    tpu.vector_store %arg13[%c0_90, %c0_91], %277 {strides = array<i32>} : memref<8x256xf32, #tpu.memory_space<vmem>>, vector<8x256xf32>,
    %c0_92 = arith.constant 0 : index
    %c0_93 = arith.constant 0 : index
    %279 = vector.load %arg7[%c0_92, %c0_93] : memref<64x256xbf16, #tpu.memory_space<vmem>>, vector<64x256xbf16>
    %cst_94 = arith.constant 0.000000e+00 : f32
    %280 = vector.broadcast %cst_94 : f32 to vector<1x64xf32>
    %c0_i32_95 = arith.constant 0 : i32
    %281 = arith.index_cast %c0_i32_95 : i32 to index
    %c0_96 = arith.constant 0 : index
    %282 = vector.load %arg12[%281, %c0_96] : memref<8x256xf32, #tpu.memory_space<vmem>>, vector<1x256xf32>
    %c7_i32_97 = arith.constant 7 : i32
    %283 = arith.subi %c7_i32_97, %c0_i32_95 : i32
    %284 = arith.index_cast %283 : i32 to index
    %c0_98 = arith.constant 0 : index
    %285 = vector.load %arg13[%284, %c0_98] : memref<8x256xf32, #tpu.memory_space<vmem>>, vector<1x256xf32>
    %286 = arith.addf %282, %285 : vector<1x256xf32>
    %287 = arith.truncf %280 : vector<1x64xf32> to vector<1x64xbf16>
    %cst_99 = arith.constant dense<0.000000e+00> : vector<1x256xf32>
    %288 = tpu.matmul %287, %279, %cst_99 {dimension_numbers = #tpu.dot_dimension_numbers<[1], [0], [0], [1], [0, 0, 1, 1], [], []>} : vector<1x64xbf16>, vector<64x256xbf16>, vector<1x256xf32> -> vector<1x256xf32>
    %289 = arith.addf %286, %288 : vector<1x256xf32>
    %290 = vector.extract_strided_slice %289 {offsets = [0, 0], sizes = [1, 192], strides = [1, 1]} : vector<1x256xf32> to vector<1x192xf32>
    %291 = arith.negf %290 : vector<1x192xf32>
    %292 = math.exp %291 : vector<1x192xf32>
    %cst_100 = arith.constant 1.000000e+00 : f32
    %293 = vector.broadcast %cst_100 : f32 to vector<1x192xf32>
    %294 = arith.addf %293, %292 : vector<1x192xf32>
    %295 = arith.divf %293, %294 : vector<1x192xf32>
    %296 = vector.extract_strided_slice %289 {offsets = [0, 192], sizes = [1, 64], strides = [1, 1]} : vector<1x256xf32> to vector<1x64xf32>
    %297 = math.tanh %296 : vector<1x64xf32>
    %298 = vector.extract_strided_slice %295 {offsets = [0, 0], sizes = [1, 64], strides = [1, 1]} : vector<1x192xf32> to vector<1x64xf32>
    %299 = vector.extract_strided_slice %295 {offsets = [0, 64], sizes = [1, 64], strides = [1, 1]} : vector<1x192xf32> to vector<1x64xf32>
    %300 = vector.extract_strided_slice %295 {offsets = [0, 128], sizes = [1, 64], strides = [1, 1]} : vector<1x192xf32> to vector<1x64xf32>
    %301 = arith.mulf %299, %280 : vector<1x64xf32>
    %302 = arith.mulf %298, %297 : vector<1x64xf32>
    %303 = arith.addf %301, %302 : vector<1x64xf32>
    %304 = math.tanh %303 : vector<1x64xf32>
    %305 = arith.mulf %300, %304 : vector<1x64xf32>
    %306 = vector.extract_strided_slice %305 {offsets = [0, 0], sizes = [1, 32], strides = [1, 1]} : vector<1x64xf32> to vector<1x32xf32>
    %307 = arith.index_cast %c0_i32_95 : i32 to index
    %c0_101 = arith.constant 0 : index
    %308 = vector.load %arg15[%307, %c0_101] : memref<8x64xf32, #tpu.memory_space<vmem>>, vector<1x32xf32>
    tpu.vector_store %arg15[%307, %c0_101], %306 {strides = array<i32>} : memref<8x64xf32, #tpu.memory_space<vmem>>, vector<1x32xf32>,
    %309 = vector.extract_strided_slice %305 {offsets = [0, 32], sizes = [1, 32], strides = [1, 1]} : vector<1x64xf32> to vector<1x32xf32>
    %c7_i32_102 = arith.constant 7 : i32
    %310 = arith.subi %c7_i32_102, %c0_i32_95 : i32
    %311 = arith.index_cast %310 : i32 to index
    %c32_103 = arith.constant 32 : index
    %312 = vector.load %arg15[%311, %c32_103] : memref<8x64xf32, #tpu.memory_space<vmem>>, vector<1x32xf32>
    tpu.vector_store %arg15[%311, %c32_103], %309 {strides = array<i32>} : memref<8x64xf32, #tpu.memory_space<vmem>>, vector<1x32xf32>,
    %c1_i32_104 = arith.constant 1 : i32
    %313 = arith.index_cast %c1_i32_104 : i32 to index
    %c0_105 = arith.constant 0 : index
    %314 = vector.load %arg12[%313, %c0_105] : memref<8x256xf32, #tpu.memory_space<vmem>>, vector<1x256xf32>
    %c7_i32_106 = arith.constant 7 : i32
    %315 = arith.subi %c7_i32_106, %c1_i32_104 : i32
    %316 = arith.index_cast %315 : i32 to index
    %c0_107 = arith.constant 0 : index
    %317 = vector.load %arg13[%316, %c0_107] : memref<8x256xf32, #tpu.memory_space<vmem>>, vector<1x256xf32>
    %318 = arith.addf %314, %317 : vector<1x256xf32>
    %319 = arith.truncf %305 : vector<1x64xf32> to vector<1x64xbf16>
    %cst_108 = arith.constant dense<0.000000e+00> : vector<1x256xf32>
    %320 = tpu.matmul %319, %279, %cst_108 {dimension_numbers = #tpu.dot_dimension_numbers<[1], [0], [0], [1], [0, 0, 1, 1], [], []>} : vector<1x64xbf16>, vector<64x256xbf16>, vector<1x256xf32> -> vector<1x256xf32>
    %321 = arith.addf %318, %320 : vector<1x256xf32>
    %322 = vector.extract_strided_slice %321 {offsets = [0, 0], sizes = [1, 192], strides = [1, 1]} : vector<1x256xf32> to vector<1x192xf32>
    %323 = arith.negf %322 : vector<1x192xf32>
    %324 = math.exp %323 : vector<1x192xf32>
    %cst_109 = arith.constant 1.000000e+00 : f32
    %325 = vector.broadcast %cst_109 : f32 to vector<1x192xf32>
    %326 = arith.addf %325, %324 : vector<1x192xf32>
    %327 = arith.divf %325, %326 : vector<1x192xf32>
    %328 = vector.extract_strided_slice %321 {offsets = [0, 192], sizes = [1, 64], strides = [1, 1]} : vector<1x256xf32> to vector<1x64xf32>
    %329 = math.tanh %328 : vector<1x64xf32>
    %330 = vector.extract_strided_slice %327 {offsets = [0, 0], sizes = [1, 64], strides = [1, 1]} : vector<1x192xf32> to vector<1x64xf32>
    %331 = vector.extract_strided_slice %327 {offsets = [0, 64], sizes = [1, 64], strides = [1, 1]} : vector<1x192xf32> to vector<1x64xf32>
    %332 = vector.extract_strided_slice %327 {offsets = [0, 128], sizes = [1, 64], strides = [1, 1]} : vector<1x192xf32> to vector<1x64xf32>
    %333 = arith.mulf %331, %303 : vector<1x64xf32>
    %334 = arith.mulf %330, %329 : vector<1x64xf32>
    %335 = arith.addf %333, %334 : vector<1x64xf32>
    %336 = math.tanh %335 : vector<1x64xf32>
    %337 = arith.mulf %332, %336 : vector<1x64xf32>
    %338 = vector.extract_strided_slice %337 {offsets = [0, 0], sizes = [1, 32], strides = [1, 1]} : vector<1x64xf32> to vector<1x32xf32>
    %339 = arith.index_cast %c1_i32_104 : i32 to index
    %c0_110 = arith.constant 0 : index
    %340 = vector.load %arg15[%339, %c0_110] : memref<8x64xf32, #tpu.memory_space<vmem>>, vector<1x32xf32>
    tpu.vector_store %arg15[%339, %c0_110], %338 {strides = array<i32>} : memref<8x64xf32, #tpu.memory_space<vmem>>, vector<1x32xf32>,
    %341 = vector.extract_strided_slice %337 {offsets = [0, 32], sizes = [1, 32], strides = [1, 1]} : vector<1x64xf32> to vector<1x32xf32>
    %c7_i32_111 = arith.constant 7 : i32
    %342 = arith.subi %c7_i32_111, %c1_i32_104 : i32
    %343 = arith.index_cast %342 : i32 to index
    %c32_112 = arith.constant 32 : index
    %344 = vector.load %arg15[%343, %c32_112] : memref<8x64xf32, #tpu.memory_space<vmem>>, vector<1x32xf32>
    tpu.vector_store %arg15[%343, %c32_112], %341 {strides = array<i32>} : memref<8x64xf32, #tpu.memory_space<vmem>>, vector<1x32xf32>,
    %c2_i32_113 = arith.constant 2 : i32
    %345 = arith.index_cast %c2_i32_113 : i32 to index
    %c0_114 = arith.constant 0 : index
    %346 = vector.load %arg12[%345, %c0_114] : memref<8x256xf32, #tpu.memory_space<vmem>>, vector<1x256xf32>
    %c7_i32_115 = arith.constant 7 : i32
    %347 = arith.subi %c7_i32_115, %c2_i32_113 : i32
    %348 = arith.index_cast %347 : i32 to index
    %c0_116 = arith.constant 0 : index
    %349 = vector.load %arg13[%348, %c0_116] : memref<8x256xf32, #tpu.memory_space<vmem>>, vector<1x256xf32>
    %350 = arith.addf %346, %349 : vector<1x256xf32>
    %351 = arith.truncf %337 : vector<1x64xf32> to vector<1x64xbf16>
    %cst_117 = arith.constant dense<0.000000e+00> : vector<1x256xf32>
    %352 = tpu.matmul %351, %279, %cst_117 {dimension_numbers = #tpu.dot_dimension_numbers<[1], [0], [0], [1], [0, 0, 1, 1], [], []>} : vector<1x64xbf16>, vector<64x256xbf16>, vector<1x256xf32> -> vector<1x256xf32>
    %353 = arith.addf %350, %352 : vector<1x256xf32>
    %354 = vector.extract_strided_slice %353 {offsets = [0, 0], sizes = [1, 192], strides = [1, 1]} : vector<1x256xf32> to vector<1x192xf32>
    %355 = arith.negf %354 : vector<1x192xf32>
    %356 = math.exp %355 : vector<1x192xf32>
    %cst_118 = arith.constant 1.000000e+00 : f32
    %357 = vector.broadcast %cst_118 : f32 to vector<1x192xf32>
    %358 = arith.addf %357, %356 : vector<1x192xf32>
    %359 = arith.divf %357, %358 : vector<1x192xf32>
    %360 = vector.extract_strided_slice %353 {offsets = [0, 192], sizes = [1, 64], strides = [1, 1]} : vector<1x256xf32> to vector<1x64xf32>
    %361 = math.tanh %360 : vector<1x64xf32>
    %362 = vector.extract_strided_slice %359 {offsets = [0, 0], sizes = [1, 64], strides = [1, 1]} : vector<1x192xf32> to vector<1x64xf32>
    %363 = vector.extract_strided_slice %359 {offsets = [0, 64], sizes = [1, 64], strides = [1, 1]} : vector<1x192xf32> to vector<1x64xf32>
    %364 = vector.extract_strided_slice %359 {offsets = [0, 128], sizes = [1, 64], strides = [1, 1]} : vector<1x192xf32> to vector<1x64xf32>
    %365 = arith.mulf %363, %335 : vector<1x64xf32>
    %366 = arith.mulf %362, %361 : vector<1x64xf32>
    %367 = arith.addf %365, %366 : vector<1x64xf32>
    %368 = math.tanh %367 : vector<1x64xf32>
    %369 = arith.mulf %364, %368 : vector<1x64xf32>
    %370 = vector.extract_strided_slice %369 {offsets = [0, 0], sizes = [1, 32], strides = [1, 1]} : vector<1x64xf32> to vector<1x32xf32>
    %371 = arith.index_cast %c2_i32_113 : i32 to index
    %c0_119 = arith.constant 0 : index
    %372 = vector.load %arg15[%371, %c0_119] : memref<8x64xf32, #tpu.memory_space<vmem>>, vector<1x32xf32>
    tpu.vector_store %arg15[%371, %c0_119], %370 {strides = array<i32>} : memref<8x64xf32, #tpu.memory_space<vmem>>, vector<1x32xf32>,
    %373 = vector.extract_strided_slice %369 {offsets = [0, 32], sizes = [1, 32], strides = [1, 1]} : vector<1x64xf32> to vector<1x32xf32>
    %c7_i32_120 = arith.constant 7 : i32
    %374 = arith.subi %c7_i32_120, %c2_i32_113 : i32
    %375 = arith.index_cast %374 : i32 to index
    %c32_121 = arith.constant 32 : index
    %376 = vector.load %arg15[%375, %c32_121] : memref<8x64xf32, #tpu.memory_space<vmem>>, vector<1x32xf32>
    tpu.vector_store %arg15[%375, %c32_121], %373 {strides = array<i32>} : memref<8x64xf32, #tpu.memory_space<vmem>>, vector<1x32xf32>,
    %c3_i32_122 = arith.constant 3 : i32
    %377 = arith.index_cast %c3_i32_122 : i32 to index
    %c0_123 = arith.constant 0 : index
    %378 = vector.load %arg12[%377, %c0_123] : memref<8x256xf32, #tpu.memory_space<vmem>>, vector<1x256xf32>
    %c7_i32_124 = arith.constant 7 : i32
    %379 = arith.subi %c7_i32_124, %c3_i32_122 : i32
    %380 = arith.index_cast %379 : i32 to index
    %c0_125 = arith.constant 0 : index
    %381 = vector.load %arg13[%380, %c0_125] : memref<8x256xf32, #tpu.memory_space<vmem>>, vector<1x256xf32>
    %382 = arith.addf %378, %381 : vector<1x256xf32>
    %383 = arith.truncf %369 : vector<1x64xf32> to vector<1x64xbf16>
    %cst_126 = arith.constant dense<0.000000e+00> : vector<1x256xf32>
    %384 = tpu.matmul %383, %279, %cst_126 {dimension_numbers = #tpu.dot_dimension_numbers<[1], [0], [0], [1], [0, 0, 1, 1], [], []>} : vector<1x64xbf16>, vector<64x256xbf16>, vector<1x256xf32> -> vector<1x256xf32>
    %385 = arith.addf %382, %384 : vector<1x256xf32>
    %386 = vector.extract_strided_slice %385 {offsets = [0, 0], sizes = [1, 192], strides = [1, 1]} : vector<1x256xf32> to vector<1x192xf32>
    %387 = arith.negf %386 : vector<1x192xf32>
    %388 = math.exp %387 : vector<1x192xf32>
    %cst_127 = arith.constant 1.000000e+00 : f32
    %389 = vector.broadcast %cst_127 : f32 to vector<1x192xf32>
    %390 = arith.addf %389, %388 : vector<1x192xf32>
    %391 = arith.divf %389, %390 : vector<1x192xf32>
    %392 = vector.extract_strided_slice %385 {offsets = [0, 192], sizes = [1, 64], strides = [1, 1]} : vector<1x256xf32> to vector<1x64xf32>
    %393 = math.tanh %392 : vector<1x64xf32>
    %394 = vector.extract_strided_slice %391 {offsets = [0, 0], sizes = [1, 64], strides = [1, 1]} : vector<1x192xf32> to vector<1x64xf32>
    %395 = vector.extract_strided_slice %391 {offsets = [0, 64], sizes = [1, 64], strides = [1, 1]} : vector<1x192xf32> to vector<1x64xf32>
    %396 = vector.extract_strided_slice %391 {offsets = [0, 128], sizes = [1, 64], strides = [1, 1]} : vector<1x192xf32> to vector<1x64xf32>
    %397 = arith.mulf %395, %367 : vector<1x64xf32>
    %398 = arith.mulf %394, %393 : vector<1x64xf32>
    %399 = arith.addf %397, %398 : vector<1x64xf32>
    %400 = math.tanh %399 : vector<1x64xf32>
    %401 = arith.mulf %396, %400 : vector<1x64xf32>
    %402 = vector.extract_strided_slice %401 {offsets = [0, 0], sizes = [1, 32], strides = [1, 1]} : vector<1x64xf32> to vector<1x32xf32>
    %403 = arith.index_cast %c3_i32_122 : i32 to index
    %c0_128 = arith.constant 0 : index
    %404 = vector.load %arg15[%403, %c0_128] : memref<8x64xf32, #tpu.memory_space<vmem>>, vector<1x32xf32>
    tpu.vector_store %arg15[%403, %c0_128], %402 {strides = array<i32>} : memref<8x64xf32, #tpu.memory_space<vmem>>, vector<1x32xf32>,
    %405 = vector.extract_strided_slice %401 {offsets = [0, 32], sizes = [1, 32], strides = [1, 1]} : vector<1x64xf32> to vector<1x32xf32>
    %c7_i32_129 = arith.constant 7 : i32
    %406 = arith.subi %c7_i32_129, %c3_i32_122 : i32
    %407 = arith.index_cast %406 : i32 to index
    %c32_130 = arith.constant 32 : index
    %408 = vector.load %arg15[%407, %c32_130] : memref<8x64xf32, #tpu.memory_space<vmem>>, vector<1x32xf32>
    tpu.vector_store %arg15[%407, %c32_130], %405 {strides = array<i32>} : memref<8x64xf32, #tpu.memory_space<vmem>>, vector<1x32xf32>,
    %c4_i32_131 = arith.constant 4 : i32
    %409 = arith.index_cast %c4_i32_131 : i32 to index
    %c0_132 = arith.constant 0 : index
    %410 = vector.load %arg12[%409, %c0_132] : memref<8x256xf32, #tpu.memory_space<vmem>>, vector<1x256xf32>
    %c7_i32_133 = arith.constant 7 : i32
    %411 = arith.subi %c7_i32_133, %c4_i32_131 : i32
    %412 = arith.index_cast %411 : i32 to index
    %c0_134 = arith.constant 0 : index
    %413 = vector.load %arg13[%412, %c0_134] : memref<8x256xf32, #tpu.memory_space<vmem>>, vector<1x256xf32>
    %414 = arith.addf %410, %413 : vector<1x256xf32>
    %415 = arith.truncf %401 : vector<1x64xf32> to vector<1x64xbf16>
    %cst_135 = arith.constant dense<0.000000e+00> : vector<1x256xf32>
    %416 = tpu.matmul %415, %279, %cst_135 {dimension_numbers = #tpu.dot_dimension_numbers<[1], [0], [0], [1], [0, 0, 1, 1], [], []>} : vector<1x64xbf16>, vector<64x256xbf16>, vector<1x256xf32> -> vector<1x256xf32>
    %417 = arith.addf %414, %416 : vector<1x256xf32>
    %418 = vector.extract_strided_slice %417 {offsets = [0, 0], sizes = [1, 192], strides = [1, 1]} : vector<1x256xf32> to vector<1x192xf32>
    %419 = arith.negf %418 : vector<1x192xf32>
    %420 = math.exp %419 : vector<1x192xf32>
    %cst_136 = arith.constant 1.000000e+00 : f32
    %421 = vector.broadcast %cst_136 : f32 to vector<1x192xf32>
    %422 = arith.addf %421, %420 : vector<1x192xf32>
    %423 = arith.divf %421, %422 : vector<1x192xf32>
    %424 = vector.extract_strided_slice %417 {offsets = [0, 192], sizes = [1, 64], strides = [1, 1]} : vector<1x256xf32> to vector<1x64xf32>
    %425 = math.tanh %424 : vector<1x64xf32>
    %426 = vector.extract_strided_slice %423 {offsets = [0, 0], sizes = [1, 64], strides = [1, 1]} : vector<1x192xf32> to vector<1x64xf32>
    %427 = vector.extract_strided_slice %423 {offsets = [0, 64], sizes = [1, 64], strides = [1, 1]} : vector<1x192xf32> to vector<1x64xf32>
    %428 = vector.extract_strided_slice %423 {offsets = [0, 128], sizes = [1, 64], strides = [1, 1]} : vector<1x192xf32> to vector<1x64xf32>
    %429 = arith.mulf %427, %399 : vector<1x64xf32>
    %430 = arith.mulf %426, %425 : vector<1x64xf32>
    %431 = arith.addf %429, %430 : vector<1x64xf32>
    %432 = math.tanh %431 : vector<1x64xf32>
    %433 = arith.mulf %428, %432 : vector<1x64xf32>
    %434 = vector.extract_strided_slice %433 {offsets = [0, 0], sizes = [1, 32], strides = [1, 1]} : vector<1x64xf32> to vector<1x32xf32>
    %435 = arith.index_cast %c4_i32_131 : i32 to index
    %c0_137 = arith.constant 0 : index
    %436 = vector.load %arg15[%435, %c0_137] : memref<8x64xf32, #tpu.memory_space<vmem>>, vector<1x32xf32>
    tpu.vector_store %arg15[%435, %c0_137], %434 {strides = array<i32>} : memref<8x64xf32, #tpu.memory_space<vmem>>, vector<1x32xf32>,
    %437 = vector.extract_strided_slice %433 {offsets = [0, 32], sizes = [1, 32], strides = [1, 1]} : vector<1x64xf32> to vector<1x32xf32>
    %c7_i32_138 = arith.constant 7 : i32
    %438 = arith.subi %c7_i32_138, %c4_i32_131 : i32
    %439 = arith.index_cast %438 : i32 to index
    %c32_139 = arith.constant 32 : index
    %440 = vector.load %arg15[%439, %c32_139] : memref<8x64xf32, #tpu.memory_space<vmem>>, vector<1x32xf32>
    tpu.vector_store %arg15[%439, %c32_139], %437 {strides = array<i32>} : memref<8x64xf32, #tpu.memory_space<vmem>>, vector<1x32xf32>,
    %c5_i32_140 = arith.constant 5 : i32
    %441 = arith.index_cast %c5_i32_140 : i32 to index
    %c0_141 = arith.constant 0 : index
    %442 = vector.load %arg12[%441, %c0_141] : memref<8x256xf32, #tpu.memory_space<vmem>>, vector<1x256xf32>
    %c7_i32_142 = arith.constant 7 : i32
    %443 = arith.subi %c7_i32_142, %c5_i32_140 : i32
    %444 = arith.index_cast %443 : i32 to index
    %c0_143 = arith.constant 0 : index
    %445 = vector.load %arg13[%444, %c0_143] : memref<8x256xf32, #tpu.memory_space<vmem>>, vector<1x256xf32>
    %446 = arith.addf %442, %445 : vector<1x256xf32>
    %447 = arith.truncf %433 : vector<1x64xf32> to vector<1x64xbf16>
    %cst_144 = arith.constant dense<0.000000e+00> : vector<1x256xf32>
    %448 = tpu.matmul %447, %279, %cst_144 {dimension_numbers = #tpu.dot_dimension_numbers<[1], [0], [0], [1], [0, 0, 1, 1], [], []>} : vector<1x64xbf16>, vector<64x256xbf16>, vector<1x256xf32> -> vector<1x256xf32>
    %449 = arith.addf %446, %448 : vector<1x256xf32>
    %450 = vector.extract_strided_slice %449 {offsets = [0, 0], sizes = [1, 192], strides = [1, 1]} : vector<1x256xf32> to vector<1x192xf32>
    %451 = arith.negf %450 : vector<1x192xf32>
    %452 = math.exp %451 : vector<1x192xf32>
    %cst_145 = arith.constant 1.000000e+00 : f32
    %453 = vector.broadcast %cst_145 : f32 to vector<1x192xf32>
    %454 = arith.addf %453, %452 : vector<1x192xf32>
    %455 = arith.divf %453, %454 : vector<1x192xf32>
    %456 = vector.extract_strided_slice %449 {offsets = [0, 192], sizes = [1, 64], strides = [1, 1]} : vector<1x256xf32> to vector<1x64xf32>
    %457 = math.tanh %456 : vector<1x64xf32>
    %458 = vector.extract_strided_slice %455 {offsets = [0, 0], sizes = [1, 64], strides = [1, 1]} : vector<1x192xf32> to vector<1x64xf32>
    %459 = vector.extract_strided_slice %455 {offsets = [0, 64], sizes = [1, 64], strides = [1, 1]} : vector<1x192xf32> to vector<1x64xf32>
    %460 = vector.extract_strided_slice %455 {offsets = [0, 128], sizes = [1, 64], strides = [1, 1]} : vector<1x192xf32> to vector<1x64xf32>
    %461 = arith.mulf %459, %431 : vector<1x64xf32>
    %462 = arith.mulf %458, %457 : vector<1x64xf32>
    %463 = arith.addf %461, %462 : vector<1x64xf32>
    %464 = math.tanh %463 : vector<1x64xf32>
    %465 = arith.mulf %460, %464 : vector<1x64xf32>
    %466 = vector.extract_strided_slice %465 {offsets = [0, 0], sizes = [1, 32], strides = [1, 1]} : vector<1x64xf32> to vector<1x32xf32>
    %467 = arith.index_cast %c5_i32_140 : i32 to index
    %c0_146 = arith.constant 0 : index
    %468 = vector.load %arg15[%467, %c0_146] : memref<8x64xf32, #tpu.memory_space<vmem>>, vector<1x32xf32>
    tpu.vector_store %arg15[%467, %c0_146], %466 {strides = array<i32>} : memref<8x64xf32, #tpu.memory_space<vmem>>, vector<1x32xf32>,
    %469 = vector.extract_strided_slice %465 {offsets = [0, 32], sizes = [1, 32], strides = [1, 1]} : vector<1x64xf32> to vector<1x32xf32>
    %c7_i32_147 = arith.constant 7 : i32
    %470 = arith.subi %c7_i32_147, %c5_i32_140 : i32
    %471 = arith.index_cast %470 : i32 to index
    %c32_148 = arith.constant 32 : index
    %472 = vector.load %arg15[%471, %c32_148] : memref<8x64xf32, #tpu.memory_space<vmem>>, vector<1x32xf32>
    tpu.vector_store %arg15[%471, %c32_148], %469 {strides = array<i32>} : memref<8x64xf32, #tpu.memory_space<vmem>>, vector<1x32xf32>,
    %c6_i32_149 = arith.constant 6 : i32
    %473 = arith.index_cast %c6_i32_149 : i32 to index
    %c0_150 = arith.constant 0 : index
    %474 = vector.load %arg12[%473, %c0_150] : memref<8x256xf32, #tpu.memory_space<vmem>>, vector<1x256xf32>
    %c7_i32_151 = arith.constant 7 : i32
    %475 = arith.subi %c7_i32_151, %c6_i32_149 : i32
    %476 = arith.index_cast %475 : i32 to index
    %c0_152 = arith.constant 0 : index
    %477 = vector.load %arg13[%476, %c0_152] : memref<8x256xf32, #tpu.memory_space<vmem>>, vector<1x256xf32>
    %478 = arith.addf %474, %477 : vector<1x256xf32>
    %479 = arith.truncf %465 : vector<1x64xf32> to vector<1x64xbf16>
    %cst_153 = arith.constant dense<0.000000e+00> : vector<1x256xf32>
    %480 = tpu.matmul %479, %279, %cst_153 {dimension_numbers = #tpu.dot_dimension_numbers<[1], [0], [0], [1], [0, 0, 1, 1], [], []>} : vector<1x64xbf16>, vector<64x256xbf16>, vector<1x256xf32> -> vector<1x256xf32>
    %481 = arith.addf %478, %480 : vector<1x256xf32>
    %482 = vector.extract_strided_slice %481 {offsets = [0, 0], sizes = [1, 192], strides = [1, 1]} : vector<1x256xf32> to vector<1x192xf32>
    %483 = arith.negf %482 : vector<1x192xf32>
    %484 = math.exp %483 : vector<1x192xf32>
    %cst_154 = arith.constant 1.000000e+00 : f32
    %485 = vector.broadcast %cst_154 : f32 to vector<1x192xf32>
    %486 = arith.addf %485, %484 : vector<1x192xf32>
    %487 = arith.divf %485, %486 : vector<1x192xf32>
    %488 = vector.extract_strided_slice %481 {offsets = [0, 192], sizes = [1, 64], strides = [1, 1]} : vector<1x256xf32> to vector<1x64xf32>
    %489 = math.tanh %488 : vector<1x64xf32>
    %490 = vector.extract_strided_slice %487 {offsets = [0, 0], sizes = [1, 64], strides = [1, 1]} : vector<1x192xf32> to vector<1x64xf32>
    %491 = vector.extract_strided_slice %487 {offsets = [0, 64], sizes = [1, 64], strides = [1, 1]} : vector<1x192xf32> to vector<1x64xf32>
    %492 = vector.extract_strided_slice %487 {offsets = [0, 128], sizes = [1, 64], strides = [1, 1]} : vector<1x192xf32> to vector<1x64xf32>
    %493 = arith.mulf %491, %463 : vector<1x64xf32>
    %494 = arith.mulf %490, %489 : vector<1x64xf32>
    %495 = arith.addf %493, %494 : vector<1x64xf32>
    %496 = math.tanh %495 : vector<1x64xf32>
    %497 = arith.mulf %492, %496 : vector<1x64xf32>
    %498 = vector.extract_strided_slice %497 {offsets = [0, 0], sizes = [1, 32], strides = [1, 1]} : vector<1x64xf32> to vector<1x32xf32>
    %499 = arith.index_cast %c6_i32_149 : i32 to index
    %c0_155 = arith.constant 0 : index
    %500 = vector.load %arg15[%499, %c0_155] : memref<8x64xf32, #tpu.memory_space<vmem>>, vector<1x32xf32>
    tpu.vector_store %arg15[%499, %c0_155], %498 {strides = array<i32>} : memref<8x64xf32, #tpu.memory_space<vmem>>, vector<1x32xf32>,
    %501 = vector.extract_strided_slice %497 {offsets = [0, 32], sizes = [1, 32], strides = [1, 1]} : vector<1x64xf32> to vector<1x32xf32>
    %c7_i32_156 = arith.constant 7 : i32
    %502 = arith.subi %c7_i32_156, %c6_i32_149 : i32
    %503 = arith.index_cast %502 : i32 to index
    %c32_157 = arith.constant 32 : index
    %504 = vector.load %arg15[%503, %c32_157] : memref<8x64xf32, #tpu.memory_space<vmem>>, vector<1x32xf32>
    tpu.vector_store %arg15[%503, %c32_157], %501 {strides = array<i32>} : memref<8x64xf32, #tpu.memory_space<vmem>>, vector<1x32xf32>,
    %c7_i32_158 = arith.constant 7 : i32
    %505 = arith.index_cast %c7_i32_158 : i32 to index
    %c0_159 = arith.constant 0 : index
    %506 = vector.load %arg12[%505, %c0_159] : memref<8x256xf32, #tpu.memory_space<vmem>>, vector<1x256xf32>
    %c7_i32_160 = arith.constant 7 : i32
    %507 = arith.subi %c7_i32_160, %c7_i32_158 : i32
    %508 = arith.index_cast %507 : i32 to index
    %c0_161 = arith.constant 0 : index
    %509 = vector.load %arg13[%508, %c0_161] : memref<8x256xf32, #tpu.memory_space<vmem>>, vector<1x256xf32>
    %510 = arith.addf %506, %509 : vector<1x256xf32>
    %511 = arith.truncf %497 : vector<1x64xf32> to vector<1x64xbf16>
    %cst_162 = arith.constant dense<0.000000e+00> : vector<1x256xf32>
    %512 = tpu.matmul %511, %279, %cst_162 {dimension_numbers = #tpu.dot_dimension_numbers<[1], [0], [0], [1], [0, 0, 1, 1], [], []>} : vector<1x64xbf16>, vector<64x256xbf16>, vector<1x256xf32> -> vector<1x256xf32>
    %513 = arith.addf %510, %512 : vector<1x256xf32>
    %514 = vector.extract_strided_slice %513 {offsets = [0, 0], sizes = [1, 192], strides = [1, 1]} : vector<1x256xf32> to vector<1x192xf32>
    %515 = arith.negf %514 : vector<1x192xf32>
    %516 = math.exp %515 : vector<1x192xf32>
    %cst_163 = arith.constant 1.000000e+00 : f32
    %517 = vector.broadcast %cst_163 : f32 to vector<1x192xf32>
    %518 = arith.addf %517, %516 : vector<1x192xf32>
    %519 = arith.divf %517, %518 : vector<1x192xf32>
    %520 = vector.extract_strided_slice %513 {offsets = [0, 192], sizes = [1, 64], strides = [1, 1]} : vector<1x256xf32> to vector<1x64xf32>
    %521 = math.tanh %520 : vector<1x64xf32>
    %522 = vector.extract_strided_slice %519 {offsets = [0, 0], sizes = [1, 64], strides = [1, 1]} : vector<1x192xf32> to vector<1x64xf32>
    %523 = vector.extract_strided_slice %519 {offsets = [0, 64], sizes = [1, 64], strides = [1, 1]} : vector<1x192xf32> to vector<1x64xf32>
    %524 = vector.extract_strided_slice %519 {offsets = [0, 128], sizes = [1, 64], strides = [1, 1]} : vector<1x192xf32> to vector<1x64xf32>
    %525 = arith.mulf %523, %495 : vector<1x64xf32>
    %526 = arith.mulf %522, %521 : vector<1x64xf32>
    %527 = arith.addf %525, %526 : vector<1x64xf32>
    %528 = math.tanh %527 : vector<1x64xf32>
    %529 = arith.mulf %524, %528 : vector<1x64xf32>
    %530 = vector.extract_strided_slice %529 {offsets = [0, 0], sizes = [1, 32], strides = [1, 1]} : vector<1x64xf32> to vector<1x32xf32>
    %531 = arith.index_cast %c7_i32_158 : i32 to index
    %c0_164 = arith.constant 0 : index
    %532 = vector.load %arg15[%531, %c0_164] : memref<8x64xf32, #tpu.memory_space<vmem>>, vector<1x32xf32>
    tpu.vector_store %arg15[%531, %c0_164], %530 {strides = array<i32>} : memref<8x64xf32, #tpu.memory_space<vmem>>, vector<1x32xf32>,
    %533 = vector.extract_strided_slice %529 {offsets = [0, 32], sizes = [1, 32], strides = [1, 1]} : vector<1x64xf32> to vector<1x32xf32>
    %c7_i32_165 = arith.constant 7 : i32
    %534 = arith.subi %c7_i32_165, %c7_i32_158 : i32
    %535 = arith.index_cast %534 : i32 to index
    %c32_166 = arith.constant 32 : index
    %536 = vector.load %arg15[%535, %c32_166] : memref<8x64xf32, #tpu.memory_space<vmem>>, vector<1x32xf32>
    tpu.vector_store %arg15[%535, %c32_166], %533 {strides = array<i32>} : memref<8x64xf32, #tpu.memory_space<vmem>>, vector<1x32xf32>,
    %c8_i32_167 = arith.constant 8 : i32
    %c0_168 = arith.constant 0 : index
    %c0_169 = arith.constant 0 : index
    %537 = vector.load %arg15[%c0_168, %c0_169] : memref<8x64xf32, #tpu.memory_space<vmem>>, vector<8x64xf32>
    %538 = arith.truncf %537 : vector<8x64xf32> to vector<8x64xbf16>
    %c0_170 = arith.constant 0 : index
    %c0_171 = arith.constant 0 : index
    %539 = vector.load %arg9[%c0_170, %c0_171] : memref<64x128xbf16, #tpu.memory_space<vmem>>, vector<64x128xbf16>
    %cst_172 = arith.constant dense<0.000000e+00> : vector<8x128xf32>
    %540 = tpu.matmul %538, %539, %cst_172 {dimension_numbers = #tpu.dot_dimension_numbers<[1], [0], [0], [1], [0, 0, 1, 1], [], []>} : vector<8x64xbf16>, vector<64x128xbf16>, vector<8x128xf32> -> vector<8x128xf32>
    %c0_173 = arith.constant 0 : index
    %c0_174 = arith.constant 0 : index
    %541 = vector.load %arg10[%c0_173, %c0_174] : memref<1x128xf32, #tpu.memory_space<vmem>>, vector<1x128xf32>
    %542 = vector.broadcast %541 : vector<1x128xf32> to vector<8x128xf32>
    %543 = arith.addf %540, %542 : vector<8x128xf32>
    %cst_175 = arith.constant dense<0xFF800000> : vector<8xf32>
    %544 = vector.multi_reduction <maximumf>, %543, %cst_175 [1] : vector<8x128xf32> to vector<8xf32>
    %545 = vector.shape_cast %544 : vector<8xf32> to vector<8x1xf32>
    %546 = vector.broadcast %545 : vector<8x1xf32> to vector<8x128xf32>
    %547 = arith.subf %543, %546 : vector<8x128xf32>
    %548 = math.exp %547 : vector<8x128xf32>
    %cst_176 = arith.constant dense<0.000000e+00> : vector<8xf32>
    %549 = vector.multi_reduction <add>, %548, %cst_176 [1] : vector<8x128xf32> to vector<8xf32>
    %550 = vector.shape_cast %549 : vector<8xf32> to vector<8x1xf32>
    %551 = math.log %550 : vector<8x1xf32>
    %552 = vector.broadcast %551 : vector<8x1xf32> to vector<8x128xf32>
    %553 = arith.subf %547, %552 : vector<8x128xf32>
    %c0_177 = arith.constant 0 : index
    %c0_178 = arith.constant 0 : index
    %554 = vector.load %arg11[%c0_177, %c0_178] : memref<8x128xf32, #tpu.memory_space<vmem>>, vector<8x128xf32>
    tpu.vector_store %arg11[%c0_177, %c0_178], %553 {strides = array<i32>} : memref<8x128xf32, #tpu.memory_space<vmem>>, vector<8x128xf32>,
    return
  }
}

</mosaic_0001>

<bundles_post_ra>
// kernel: forward.1
= control target key start
LH: loop header
LB: loop body
LE: loop exit
PB: predicated region body
PF: predicated region fallthrough
CT: control target
= control target key end

     0   :  { %v2482_v2 = vmov 0   ;;  %vm77_vm0 = vcmask 261120   ;;  %s3032_s0 = inlined_call_operand.vmem [shape: bf16[8,32], index: 0, kind: input, shape index: {}]   ;;  %s3033_s1 = inlined_call_operand.vmem [shape: bf16[32,256], index: 1, kind: input, shape index: {}]   ;;  %s3034_s2 = inlined_call_operand.vmem [shape: bf16[32,256], index: 2, kind: input, shape index: {}]   ;;  %s3035_s3 = inlined_call_operand.vmem [shape: bf16[64,256], index: 3, kind: input, shape index: {}]   ;;  %s3036_s4 = inlined_call_operand.vmem [shape: f32[1,256], index: 4, kind: input, shape index: {}]   ;;  %s3037_s5 = inlined_call_operand.vmem [shape: bf16[64,256], index: 5, kind: input, shape index: {}]   ;;  %s3038_s6 = inlined_call_operand.vmem [shape: bf16[64,256], index: 6, kind: input, shape index: {}]   ;;  %s3039_s7 = inlined_call_operand.vmem [shape: bf16[64,256], index: 7, kind: input, shape index: {}]   ;;  %s3040_s8 = inlined_call_operand.vmem [shape: f32[1,256], index: 8, kind: input, shape index: {}]   ;;  %s3041_s9 = inlined_call_operand.vmem [shape: bf16[64,128], index: 9, kind: input, shape index: {}]   ;;  %s3042_s10 = inlined_call_operand.vmem [shape: f32[1,128], index: 10, kind: input, shape index: {}]   ;;  %s3043_s11 = inlined_call_operand.hbm [shape: f32[8,128], index: 11, kind: output, shape index: {}]  }
   0x1   :  { %v2262_v0 = vld [vmem:[%s3033_s1 + $0x4] ss:$8 sps:$4 sm:$0xff]   ;;  %v2264_v1 = vld [vmem:[%s3033_s1] ss:$8 sps:$4 sm:$0xff]   ;;  %113 = vmatprep.mubr.bf16.mxu1 %v2482_v2  ;;  %279 = vmatprep.mubr.bf16.mxu0 %v2482_v2  ;;  %v2268_v5 = vld [vmem:[%s3033_s1 + $0x14] ss:$8 sps:$4 sm:$0xff]  }
   0x2   :  { %81 = vmatprep.subr.bf16.mxu1 %v2262_v0  ;;  %v2559_v3 = vld [vmem:[%s3035_s3 + $0x4] ss:$8 sps:$4 sm:$0xff]   ;;  %v2564_v4 = vld [vmem:[%s3035_s3] ss:$8 sps:$4 sm:$0xff]   ;;  %v2270_v6 = vld [vmem:[%s3033_s1 + $0x10] ss:$8 sps:$4 sm:$0xff]  }
   0x3   :  { %82 = vmatpush1.bf16.msra.mxu1 %v2264_v1  ;;  %247 = vmatprep.subr.bf16.mxu0 %v2559_v3  ;;  %v2576_v7 = vld [vmem:[%s3035_s3 + $0x14] ss:$8 sps:$4 sm:$0xff]   ;;  %v2582_v8 = vld [vmem:[%s3035_s3 + $0x10] ss:$8 sps:$4 sm:$0xff]   ;;  %v40_v9 = vld [vmem:[%s3032_s0] sm:$0xf] }
   0x4   :  { %248 = vmatpush1.bf16.msra.mxu0 %v2564_v4  ;;  %83 = vmatprep.subr.bf16.mxu1 %v2268_v5  ;;  %v2274_v10 = vld [vmem:[%s3034_s2] ss:$8 sps:$4 sm:$0xff]   ;;  %v2276_v11 = vld [vmem:[%s3034_s2 + $0x4] ss:$8 sps:$4 sm:$0xff]   ;;  %v2282_v14 = vld [vmem:[%s3034_s2 + $0x14] ss:$8 sps:$4 sm:$0xff]  }
   0x5   :  { %249 = vmatprep.subr.bf16.mxu0 %v2576_v7  ;;  %v2597_v12 = vld [vmem:[%s3035_s3 + $0x24] ss:$8 sps:$4 sm:$0xff]   ;;  %v2603_v13 = vld [vmem:[%s3035_s3 + $0x20] ss:$8 sps:$4 sm:$0xff]   ;;  %v2280_v15 = vld [vmem:[%s3034_s2 + $0x10] ss:$8 sps:$4 sm:$0xff]  }
   0x6   :  { %v2616_v16 = vld [vmem:[%s3035_s3 + $0x34] ss:$8 sps:$4 sm:$0xff]   ;;  %v2622_v17 = vld [vmem:[%s3035_s3 + $0x30] ss:$8 sps:$4 sm:$0xff]  }
   0x7   :  { %84 = vmatpush1.bf16.msra.mxu1 %v2270_v6 }
   0x8   :  { %148 = vmatprep.subr.bf16.mxu1 %v2276_v11  ;;  %250 = vmatpush1.bf16.msra.mxu0 %v2582_v8 }
   0x9   :  { %251 = vmatprep.subr.bf16.mxu0 %v2597_v12 }
   0xa   :  { %2163 = vmatmul.mubr.msk.bf16.vlgmr.msra.gmra.mrb[0].mxu1 %vm77_vm0, %v40_v9 }
   0xb   :  { %149 = vmatpush1.bf16.msra.mxu1 %v2274_v10  ;;  %180 = vmatprep.mubr.bf16.mxu1 %v2482_v2 }
   0xc   :  { %150 = vmatprep.subr.bf16.mxu1 %v2282_v14  ;;  %252 = vmatpush1.bf16.msra.mxu0 %v2603_v13 }
   0xd   :  { %253 = vmatprep.subr.bf16.mxu0 %v2616_v16 }
   0xf   :  { %151 = vmatpush1.bf16.msra.mxu1 %v2280_v15 }
  0x10   :  { %348 = vmatprep.subr.bf16.mxu1 %v2559_v3  ;;  %254 = vmatpush1.bf16.msra.mxu0 %v2622_v17 }
  0x11   :  { %447 = vmatprep.subr.bf16.mxu0 %v2559_v3 }
  0x12   :  { %2168 = vmatmul.mubr.msk.bf16.vlgmr.msra.gmra.mrb[4].mxu1 %vm77_vm0, %v40_v9 }
  0x13   :  { %349 = vmatpush1.bf16.msra.mxu1 %v2564_v4  ;;  %380 = vmatprep.mubr.bf16.mxu1 %v2482_v2 }
  0x14   :  { %280 = vmatmul.mubr.bf16.vlgmr.msra.gmra.mrb[0].mxu0 %v2482_v2  ;;  %350 = vmatprep.subr.bf16.mxu1 %v2576_v7 }
  0x15   :  { %448 = vmatpush1.bf16.msra.mxu0 %v2564_v4  ;;  %479 = vmatprep.mubr.bf16.mxu0 %v2482_v2 }
  0x16   :  { %449 = vmatprep.subr.bf16.mxu0 %v2576_v7 }
  0x17   :  { %16 = vsyncpa [#allocation7], 0  ;;  %351 = vmatpush1.bf16.msra.mxu1 %v2582_v8  ;;  %v47_v18 = vlaneseq  ;;  %v45_v21 = vld [vmem:[%s3036_s4] sm:$0x3]  ;;  %v2483_v28 = vmov 1966171168  }
  0x18   :  { %352 = vmatprep.subr.bf16.mxu1 %v2597_v12  ;;  %v292_v29 = vunpack.c.l.s4 %v2483_v28  ;;  %s2484_s4 = smov 64   ;;  %vm335_vm1 = vcmask 253952   ;;  %vm337_vm2 = vcmask 516352   ;;  %vm243_vm3 = vcmask 523264  }
  0x19   :  { %450 = vmatpush1.bf16.msra.mxu0 %v2582_v8  ;;  %v2649_v19 = vshrl.u32 %v47_v18, 7  ;;  %vm2486_vm4 = vmmov 0  }
  0x1a   :  { %451 = vmatprep.subr.bf16.mxu0 %v2597_v12  ;;  %v293_v33 = vunpack.c.0.s8 %v292_v29 }
  0x1b   :  { %353 = vmatpush1.bf16.msra.mxu1 %v2603_v13  ;;  %v49_v20 = vsub.s32 0, %v2649_v19  ;;  %v53_v22 = vsub.s32 1, %v2649_v19 }
  0x1c   :  { %354 = vmatprep.subr.bf16.mxu1 %v2616_v16  ;;  %v2661_v36 = vsub.s32 %v293_v33, %v2649_v19 }
  0x1d   :  { %452 = vmatpush1.bf16.msra.mxu0 %v2603_v13  ;;  %v50_v23 = vrot.slane %v45_v21, %v49_v20  ;;  %v54_v24 = vrot.slane %v45_v21, %v53_v22 }
  0x1e   :  { %453 = vmatprep.subr.bf16.mxu0 %v2616_v16 }
  0x1f   :  { %355 = vmatpush1.bf16.msra.mxu1 %v2622_v17 }
  0x20   :  { %546 = vmatprep.subr.bf16.mxu1 %v2559_v3 }
  0x21   :  { %454 = vmatpush1.bf16.msra.mxu0 %v2622_v17 }
  0x22   :  { %645 = vmatprep.subr.bf16.mxu0 %v2559_v3 }
  0xdd   :  { %v115_v25 = vpop.f32.mrb[0].mxu1 }
  0xde   :  { %v116_v26 = vadd.f32 %v115_v25, %v50_v23  ;;  %v117_v27 = vpop.f32.mrb[1].mxu1 }
  0xdf   :  { %v118_v30 = vadd.f32 %v117_v27, %v54_v24  ;;  %v119_v31 = vpop.f32.mrb[2].mxu1 }
  0xe0   :  { %122 = vst [vmem:[#allocation2] sm:$0xff] %v116_v26  ;;  %v120_v32 = vpop.f32.mrb[3].mxu1 }
  0xe1   :  { %123 = vst [vmem:[#allocation2 + $0x8] sm:$0xff] %v118_v30 }
  0xe5   :  { %v182_v34 = vpop.f32.mrb[4].mxu1 }
  0xe6   :  { %189 = vst [vmem:[#allocation3] sm:$0xff] %v182_v34  ;;  %v184_v35 = vpop.f32.mrb[5].mxu1 }
  0xe7   :  { %190 = vst [vmem:[#allocation3 + $0x8] sm:$0xff] %v184_v35  ;;  %v186_v37 = vpop.f32.mrb[6].mxu1  ;;  %v281_v38 = vpop.f32.mrb[0].mxu0 }
  0xe8   :  { %v187_v39 = vpop.f32.mrb[7].mxu1  ;;  %v283_v40 = vpop.f32.mrb[1].mxu0  ;;  %v199_v46 = vld [vmem:[#allocation2] ss:$8 sm:$0x3] }
  0xe9   :  { %v290_v41 = vcombine.low %v281_v38, %v283_v40  ;;  %v285_v42 = vpop.f32.mrb[2].mxu0  ;;  %v340_v18 = vld [vmem:[#allocation2 + $0x1] ss:$8 sm:$0x3] }
  0xea   :  { %v286_v43 = vpop.f32.mrb[3].mxu0 }
  0xeb   :  { %v297_v44 = vrot.slane %v290_v41, %v2661_v36 }
  0xed   :  { %v304_v45 = vrot.slane %v297_v44, %v2661_v36 }
  0xee   :  { %v201_v47 = vld [vmem:[#allocation3 + $0x7] ss:$8 sm:$0x3]  ;;  %v342_v14 = vld [vmem:[#allocation3 + $0x6] ss:$8 sm:$0x3] }
  0xef   :  { %v202_v48 = vadd.f32 %v201_v47, %v199_v46  ;;  %v343_v23 = vadd.f32 %v342_v14, %v340_v18  ;;  %v441_v47 = vld [vmem:[#allocation3 + $0x5] ss:$8 sm:$0x3] }
  0xf1   :  { %v306_v49 = vadd.f32 %v304_v45, %v202_v48 }
  0xf3   :  { %314 = vrot.lane.b32.xlu0 %v306_v49, %s2484_s4  ;;  %v2177_v50 = vmul.f32 -1.442695, %v306_v49  ;;  %v439_v49 = vld [vmem:[#allocation2 + $0x2] ss:$8 sm:$0x3] }
  0xf5   :  { %2326 = vpow2.f32 %v2177_v50 }
  0xff   :  { %v2327_v51 = vpop.eup %2326 }
 0x100   :  { %v310_v52 = vadd.f32 1.0, %v2327_v51  ;;  %v442_v51 = vadd.f32 %v441_v47, %v439_v49  ;;  %v639_v49 = vld [vmem:[#allocation3 + $0x3] ss:$8 sm:$0x3] }
 0x102   :  { %2328 = vrcp.f32 %v310_v52 }
 0x10c   :  { %v2329_v55 = vpop.eup %2328 }
 0x10d   :  { %v319_v58 = vmul.f32 0.0, %v2329_v55  ;;  %v328_v62 = vrot.slane %v2329_v55, 1 }
 0x165   :  { %v315_v53 = vpop.permute.xlu0 %314 }
 0x166   :  { %v316_v54 = vrot.slane %v315_v53, 1 }
 0x168   :  { %2330 = vtanh.f32 %v316_v54 }
 0x172   :  { %v2331_v56 = vpop.eup %2330 }
 0x173   :  { %v320_v57 = vmul.f32 %v2331_v56, %v2329_v55 }
 0x175   :  { %322 = vrot.lane.b32.xlu0 %v320_v57, %s2484_s4 }
 0x1e7   :  { %v323_v59 = vpop.permute.xlu0 %322 }
 0x1e8   :  { %v325_v60 = vadd.f32 %v323_v59, %v319_v58 }
 0x1ea   :  { %2332 = vtanh.f32 %v325_v60 }
 0x1f4   :  { %v2333_v61 = vpop.eup %2332 }
 0x1f5   :  { %331 = vrot.lane.b32.xlu1 %v2333_v61, %s2484_s4 }
 0x267   :  { %v332_v63 = vpop.permute.xlu1 %331 }
 0x268   :  { %v334_v0 = vmul.f32 %v332_v63, %v328_v62 }
 0x26a   :  { %336 = vst.msk [vmem:[#allocation4] sm:$0x1] %vm335_vm1, %v334_v0  ;;  %v344_v1 = vpack.c.bf16 %v334_v0, %v334_v0 }
 0x26b   :  { %338 = vst.msk [vmem:[#allocation4 + $0x7] sm:$0x1] %vm337_vm2, %v334_v0 }
 0x26c   :  { %2178 = vmatmul.mubr.msk.bf16.vlgmr.msra.gmra.mrb[8].mxu1 %vm243_vm3, %v344_v1 }
 0x26d   :  { %547 = vmatpush1.bf16.msra.mxu1 %v2564_v4  ;;  %578 = vmatprep.mubr.bf16.mxu1 %v2482_v2 }
 0x26e   :  { %548 = vmatprep.subr.bf16.mxu1 %v2576_v7 }
 0x271   :  { %549 = vmatpush1.bf16.msra.mxu1 %v2582_v8 }
 0x272   :  { %550 = vmatprep.subr.bf16.mxu1 %v2597_v12 }
 0x275   :  { %551 = vmatpush1.bf16.msra.mxu1 %v2603_v13 }
 0x276   :  { %552 = vmatprep.subr.bf16.mxu1 %v2616_v16 }
 0x279   :  { %553 = vmatpush1.bf16.msra.mxu1 %v2622_v17 }
 0x27a   :  { %744 = vmatprep.subr.bf16.mxu1 %v2559_v3 }
 0x33f   :  { %v382_v5 = vpop.f32.mrb[8].mxu1 }
 0x340   :  { %v384_v6 = vpop.f32.mrb[9].mxu1 }
 0x341   :  { %v391_v9 = vcombine.low %v382_v5, %v384_v6  ;;  %v386_v10 = vpop.f32.mrb[10].mxu1 }
 0x342   :  { %v387_v11 = vpop.f32.mrb[11].mxu1 }
 0x343   :  { %v398_v15 = vrot.slane %v391_v9, %v2661_v36 }
 0x345   :  { %v405_v21 = vrot.slane %v398_v15, %v2661_v36 }
 0x347   :  { %v407_v24 = vadd.f32 %v405_v21, %v343_v23  ;;  %v540_v21 = vld [vmem:[#allocation3 + $0x4] ss:$8 sm:$0x3] }
 0x349   :  { %415 = vrot.lane.b32.xlu1 %v407_v24, %s2484_s4  ;;  %v2179_v25 = vmul.f32 -1.442695, %v407_v24  ;;  %v538_v24 = vld [vmem:[#allocation2 + $0x3] ss:$8 sm:$0x3] }
 0x34b   :  { %2334 = vpow2.f32 %v2179_v25 }
 0x355   :  { %v2335_v26 = vpop.eup %2334 }
 0x356   :  { %v411_v27 = vadd.f32 1.0, %v2335_v26  ;;  %v541_v26 = vadd.f32 %v540_v21, %v538_v24 }
 0x358   :  { %2336 = vrcp.f32 %v411_v27 }
 0x362   :  { %v2337_v30 = vpop.eup %2336 }
 0x363   :  { %v420_v33 = vmul.f32 %v2337_v30, %v325_v60  ;;  %v429_v38 = vrot.slane %v2337_v30, 1 }
 0x3bb   :  { %v416_v28 = vpop.permute.xlu1 %415 }
 0x3bc   :  { %v417_v29 = vrot.slane %v416_v28, 1 }
 0x3be   :  { %2338 = vtanh.f32 %v417_v29 }
 0x3c8   :  { %v2339_v31 = vpop.eup %2338 }
 0x3c9   :  { %v421_v32 = vmul.f32 %v2339_v31, %v2337_v30 }
 0x3cb   :  { %423 = vrot.lane.b32.xlu0 %v421_v32, %s2484_s4 }
 0x43d   :  { %v424_v34 = vpop.permute.xlu0 %423 }
 0x43e   :  { %v426_v35 = vadd.f32 %v424_v34, %v420_v33 }
 0x440   :  { %2340 = vtanh.f32 %v426_v35 }
 0x44a   :  { %v2341_v37 = vpop.eup %2340 }
 0x44b   :  { %432 = vrot.lane.b32.xlu1 %v2341_v37, %s2484_s4 }
 0x4bd   :  { %v433_v39 = vpop.permute.xlu1 %432 }
 0x4be   :  { %v435_v40 = vmul.f32 %v433_v39, %v429_v38 }
 0x4c0   :  { %436 = vst.msk [vmem:[#allocation4 + $0x1] sm:$0x1] %vm335_vm1, %v435_v40  ;;  %v443_v41 = vpack.c.bf16 %v435_v40, %v435_v40 }
 0x4c1   :  { %437 = vst.msk [vmem:[#allocation4 + $0x6] sm:$0x1] %vm337_vm2, %v435_v40 }
 0x4c2   :  { %2180 = vmatmul.mubr.msk.bf16.vlgmr.msra.gmra.mrb[4].mxu0 %vm243_vm3, %v443_v41 }
 0x4c3   :  { %646 = vmatpush1.bf16.msra.mxu0 %v2564_v4  ;;  %677 = vmatprep.mubr.bf16.mxu0 %v2482_v2 }
 0x4c4   :  { %647 = vmatprep.subr.bf16.mxu0 %v2576_v7 }
 0x4c7   :  { %648 = vmatpush1.bf16.msra.mxu0 %v2582_v8 }
 0x4c8   :  { %649 = vmatprep.subr.bf16.mxu0 %v2597_v12 }
 0x4cb   :  { %650 = vmatpush1.bf16.msra.mxu0 %v2603_v13 }
 0x4cc   :  { %651 = vmatprep.subr.bf16.mxu0 %v2616_v16 }
 0x4cf   :  { %652 = vmatpush1.bf16.msra.mxu0 %v2622_v17 }
 0x4d0   :  { %843 = vmatprep.subr.bf16.mxu0 %v2559_v3 }
 0x595   :  { %v481_v42 = vpop.f32.mrb[4].mxu0 }
 0x596   :  { %v483_v43 = vpop.f32.mrb[5].mxu0 }
 0x597   :  { %v490_v44 = vcombine.low %v481_v42, %v483_v43  ;;  %v485_v45 = vpop.f32.mrb[6].mxu0 }
 0x598   :  { %v486_v46 = vpop.f32.mrb[7].mxu0 }
 0x599   :  { %v497_v48 = vrot.slane %v490_v44, %v2661_v36 }
 0x59b   :  { %v504_v50 = vrot.slane %v497_v48, %v2661_v36 }
 0x59d   :  { %v506_v52 = vadd.f32 %v504_v50, %v442_v51  ;;  %v637_v51 = vld [vmem:[#allocation2 + $0x4] ss:$8 sm:$0x3] }
 0x59f   :  { %514 = vrot.lane.b32.xlu0 %v506_v52, %s2484_s4  ;;  %v2181_v53 = vmul.f32 -1.442695, %v506_v52 }
 0x5a1   :  { %2342 = vpow2.f32 %v2181_v53  ;;  %v640_v53 = vadd.f32 %v639_v49, %v637_v51 }
 0x5ab   :  { %v2343_v54 = vpop.eup %2342 }
 0x5ac   :  { %v510_v55 = vadd.f32 1.0, %v2343_v54 }
 0x5ae   :  { %2344 = vrcp.f32 %v510_v55 }
 0x5b8   :  { %v2345_v58 = vpop.eup %2344 }
 0x5b9   :  { %v519_v61 = vmul.f32 %v2345_v58, %v426_v35  ;;  %v528_v1 = vrot.slane %v2345_v58, 1 }
 0x611   :  { %v515_v56 = vpop.permute.xlu0 %514 }
 0x612   :  { %v516_v57 = vrot.slane %v515_v56, 1 }
 0x614   :  { %2346 = vtanh.f32 %v516_v57 }
 0x61e   :  { %v2347_v59 = vpop.eup %2346 }
 0x61f   :  { %v520_v60 = vmul.f32 %v2347_v59, %v2345_v58 }
 0x621   :  { %522 = vrot.lane.b32.xlu1 %v520_v60, %s2484_s4 }
 0x693   :  { %v523_v62 = vpop.permute.xlu1 %522 }
 0x694   :  { %v525_v63 = vadd.f32 %v523_v62, %v519_v61 }
 0x696   :  { %2348 = vtanh.f32 %v525_v63 }
 0x6a0   :  { %v2349_v0 = vpop.eup %2348 }
 0x6a1   :  { %531 = vrot.lane.b32.xlu0 %v2349_v0, %s2484_s4 }
 0x713   :  { %v532_v5 = vpop.permute.xlu0 %531 }
 0x714   :  { %v534_v6 = vmul.f32 %v532_v5, %v528_v1 }
 0x716   :  { %535 = vst.msk [vmem:[#allocation4 + $0x2] sm:$0x1] %vm335_vm1, %v534_v6  ;;  %v542_v9 = vpack.c.bf16 %v534_v6, %v534_v6 }
 0x717   :  { %536 = vst.msk [vmem:[#allocation4 + $0x5] sm:$0x1] %vm337_vm2, %v534_v6 }
 0x718   :  { %2182 = vmatmul.mubr.msk.bf16.vlgmr.msra.gmra.mrb[12].mxu1 %vm243_vm3, %v542_v9 }
 0x719   :  { %745 = vmatpush1.bf16.msra.mxu1 %v2564_v4  ;;  %776 = vmatprep.mubr.bf16.mxu1 %v2482_v2 }
 0x71a   :  { %746 = vmatprep.subr.bf16.mxu1 %v2576_v7 }
 0x71d   :  { %747 = vmatpush1.bf16.msra.mxu1 %v2582_v8 }
 0x71e   :  { %748 = vmatprep.subr.bf16.mxu1 %v2597_v12 }
 0x721   :  { %749 = vmatpush1.bf16.msra.mxu1 %v2603_v13 }
 0x722   :  { %750 = vmatprep.subr.bf16.mxu1 %v2616_v16 }
 0x725   :  { %751 = vmatpush1.bf16.msra.mxu1 %v2622_v17 }
 0x726   :  { %941 = vmatprep.subr.bf16.mxu1 %v2559_v3 }
 0x7eb   :  { %v580_v10 = vpop.f32.mrb[12].mxu1 }
 0x7ec   :  { %v582_v11 = vpop.f32.mrb[13].mxu1 }
 0x7ed   :  { %v589_v14 = vcombine.low %v580_v10, %v582_v11  ;;  %v584_v15 = vpop.f32.mrb[14].mxu1 }
 0x7ee   :  { %v585_v18 = vpop.f32.mrb[15].mxu1 }
 0x7ef   :  { %v596_v23 = vrot.slane %v589_v14, %v2661_v36 }
 0x7f1   :  { %v603_v25 = vrot.slane %v596_v23, %v2661_v36 }
 0x7f3   :  { %v605_v27 = vadd.f32 %v603_v25, %v541_v26  ;;  %v736_v25 = vld [vmem:[#allocation2 + $0x5] ss:$8 sm:$0x3] }
 0x7f5   :  { %613 = vrot.lane.b32.xlu1 %v605_v27, %s2484_s4  ;;  %v2183_v28 = vmul.f32 -1.442695, %v605_v27 }
 0x7f7   :  { %2350 = vpow2.f32 %v2183_v28 }
 0x801   :  { %v2351_v29 = vpop.eup %2350 }
 0x802   :  { %v609_v30 = vadd.f32 1.0, %v2351_v29 }
 0x804   :  { %2352 = vrcp.f32 %v609_v30 }
 0x80e   :  { %v2353_v32 = vpop.eup %2352 }
 0x80f   :  { %v618_v35 = vmul.f32 %v2353_v32, %v525_v63  ;;  %v627_v40 = vrot.slane %v2353_v32, 1 }
 0x867   :  { %v614_v3 = vpop.permute.xlu1 %613 }
 0x868   :  { %v615_v31 = vrot.slane %v614_v3, 1 }
 0x86a   :  { %2354 = vtanh.f32 %v615_v31 }
 0x874   :  { %v2355_v33 = vpop.eup %2354 }
 0x875   :  { %v619_v34 = vmul.f32 %v2355_v33, %v2353_v32 }
 0x877   :  { %621 = vrot.lane.b32.xlu0 %v619_v34, %s2484_s4 }
 0x8e9   :  { %v622_v37 = vpop.permute.xlu0 %621 }
 0x8ea   :  { %v624_v38 = vadd.f32 %v622_v37, %v618_v35 }
 0x8ec   :  { %2356 = vtanh.f32 %v624_v38 }
 0x8f6   :  { %v2357_v39 = vpop.eup %2356 }
 0x8f7   :  { %630 = vrot.lane.b32.xlu1 %v2357_v39, %s2484_s4 }
 0x969   :  { %v631_v41 = vpop.permute.xlu1 %630 }
 0x96a   :  { %v633_v42 = vmul.f32 %v631_v41, %v627_v40 }
 0x96c   :  { %634 = vst.msk [vmem:[#allocation4 + $0x3] sm:$0x1] %vm335_vm1, %v633_v42  ;;  %v641_v43 = vpack.c.bf16 %v633_v42, %v633_v42 }
 0x96d   :  { %635 = vst.msk [vmem:[#allocation4 + $0x4] sm:$0x1] %vm337_vm2, %v633_v42 }
 0x96e   :  { %2184 = vmatmul.mubr.msk.bf16.vlgmr.msra.gmra.mrb[8].mxu0 %vm243_vm3, %v641_v43 }
 0x96f   :  { %844 = vmatpush1.bf16.msra.mxu0 %v2564_v4  ;;  %875 = vmatprep.mubr.bf16.mxu0 %v2482_v2 }
 0x970   :  { %845 = vmatprep.subr.bf16.mxu0 %v2576_v7 }
 0x973   :  { %846 = vmatpush1.bf16.msra.mxu0 %v2582_v8 }
 0x974   :  { %847 = vmatprep.subr.bf16.mxu0 %v2597_v12 }
 0x977   :  { %848 = vmatpush1.bf16.msra.mxu0 %v2603_v13 }
 0x978   :  { %849 = vmatprep.subr.bf16.mxu0 %v2616_v16 }
 0x97b   :  { %850 = vmatpush1.bf16.msra.mxu0 %v2622_v17 }
 0xa41   :  { %v679_v44 = vpop.f32.mrb[8].mxu0 }
 0xa42   :  { %v681_v45 = vpop.f32.mrb[9].mxu0 }
 0xa43   :  { %v688_v46 = vcombine.low %v679_v44, %v681_v45  ;;  %v683_v47 = vpop.f32.mrb[10].mxu0  ;;  %v837_v44 = vld [vmem:[#allocation3 + $0x1] ss:$8 sm:$0x3] }
 0xa44   :  { %v684_v48 = vpop.f32.mrb[11].mxu0 }
 0xa45   :  { %v695_v50 = vrot.slane %v688_v46, %v2661_v36  ;;  %v835_v46 = vld [vmem:[#allocation2 + $0x6] ss:$8 sm:$0x3] }
 0xa46   :  { %v838_v48 = vadd.f32 %v837_v44, %v835_v46  ;;  %v2816_v44 = vld [vmem:[%s3039_s7 + $0x4] ss:$8 sps:$4 sm:$0xff]  }
 0xa47   :  { %v702_v52 = vrot.slane %v695_v50, %v2661_v36 }
 0xa49   :  { %v704_v54 = vadd.f32 %v702_v52, %v640_v53 }
 0xa4b   :  { %712 = vrot.lane.b32.xlu0 %v704_v54, %s2484_s4  ;;  %v2185_v55 = vmul.f32 -1.442695, %v704_v54 }
 0xa4d   :  { %2358 = vpow2.f32 %v2185_v55 }
 0xa57   :  { %v2359_v56 = vpop.eup %2358 }
 0xa58   :  { %v708_v57 = vadd.f32 1.0, %v2359_v56 }
 0xa5a   :  { %2360 = vrcp.f32 %v708_v57 }
 0xa64   :  { %v2361_v60 = vpop.eup %2360 }
 0xa65   :  { %v717_v63 = vmul.f32 %v2361_v60, %v624_v38  ;;  %v726_v6 = vrot.slane %v2361_v60, 1 }
 0xabd   :  { %v713_v58 = vpop.permute.xlu0 %712 }
 0xabe   :  { %v714_v59 = vrot.slane %v713_v58, 1 }
 0xac0   :  { %2362 = vtanh.f32 %v714_v59 }
 0xaca   :  { %v2363_v61 = vpop.eup %2362 }
 0xacb   :  { %v718_v62 = vmul.f32 %v2363_v61, %v2361_v60 }
 0xacd   :  { %720 = vrot.lane.b32.xlu1 %v718_v62, %s2484_s4 }
 0xb3f   :  { %v721_v0 = vpop.permute.xlu1 %720 }
 0xb40   :  { %v723_v1 = vadd.f32 %v721_v0, %v717_v63 }
 0xb42   :  { %2364 = vtanh.f32 %v723_v1 }
 0xb4c   :  { %v2365_v5 = vpop.eup %2364 }
 0xb4d   :  { %729 = vrot.lane.b32.xlu0 %v2365_v5, %s2484_s4 }
 0xbbf   :  { %v730_v9 = vpop.permute.xlu0 %729 }
 0xbc0   :  { %v732_v10 = vmul.f32 %v730_v9, %v726_v6 }
 0xbc2   :  { %733 = vst.msk [vmem:[#allocation4 + $0x4] sm:$0x1] %vm335_vm1, %v732_v10  ;;  %v740_v11 = vpack.c.bf16 %v732_v10, %v732_v10 }
 0xbc3   :  { %734 = vst.msk [vmem:[#allocation4 + $0x3] sm:$0x1] %vm337_vm2, %v732_v10 }
 0xbc4   :  { %2186 = vmatmul.mubr.msk.bf16.vlgmr.msra.gmra.mrb[16].mxu1 %vm243_vm3, %v740_v11 }
 0xbc5   :  { %942 = vmatpush1.bf16.msra.mxu1 %v2564_v4  ;;  %973 = vmatprep.mubr.bf16.mxu1 %v2482_v2  ;;  %v738_v4 = vld [vmem:[#allocation3 + $0x2] ss:$8 sm:$0x3] }
 0xbc6   :  { %943 = vmatprep.subr.bf16.mxu1 %v2576_v7 }
 0xbc9   :  { %944 = vmatpush1.bf16.msra.mxu1 %v2582_v8  ;;  %v739_v8 = vadd.f32 %v738_v4, %v736_v25 }
 0xbca   :  { %945 = vmatprep.subr.bf16.mxu1 %v2597_v12 }
 0xbcd   :  { %946 = vmatpush1.bf16.msra.mxu1 %v2603_v13 }
 0xbce   :  { %947 = vmatprep.subr.bf16.mxu1 %v2616_v16 }
 0xbd1   :  { %948 = vmatpush1.bf16.msra.mxu1 %v2622_v17 }
 0xc97   :  { %v778_v14 = vpop.f32.mrb[16].mxu1 }
 0xc98   :  { %v780_v15 = vpop.f32.mrb[17].mxu1 }
 0xc99   :  { %v787_v18 = vcombine.low %v778_v14, %v780_v15  ;;  %v782_v21 = vpop.f32.mrb[18].mxu1  ;;  %v935_v14 = vld [vmem:[#allocation3] ss:$8 sm:$0x3] }
 0xc9a   :  { %v783_v23 = vpop.f32.mrb[19].mxu1 }
 0xc9b   :  { %v794_v24 = vrot.slane %v787_v18, %v2661_v36  ;;  %v934_v18 = vld [vmem:[#allocation2 + $0x7] ss:$8 sm:$0x3] }
 0xc9c   :  { %v936_v23 = vadd.f32 %v935_v14, %v934_v18 }
 0xc9d   :  { %v801_v7 = vrot.slane %v794_v24, %v2661_v36 }
 0xc9f   :  { %v803_v26 = vadd.f32 %v801_v7, %v739_v8 }
 0xca1   :  { %811 = vrot.lane.b32.xlu1 %v803_v26, %s2484_s4  ;;  %v2187_v12 = vmul.f32 -1.442695, %v803_v26 }
 0xca3   :  { %2366 = vpow2.f32 %v2187_v12 }
 0xcad   :  { %v2367_v13 = vpop.eup %2366 }
 0xcae   :  { %v807_v16 = vadd.f32 1.0, %v2367_v13 }
 0xcb0   :  { %2368 = vrcp.f32 %v807_v16 }
 0xcba   :  { %v2369_v28 = vpop.eup %2368 }
 0xcbb   :  { %v816_v3 = vmul.f32 %v2369_v28, %v723_v1  ;;  %v825_v34 = vrot.slane %v2369_v28, 1 }
 0xd13   :  { %v812_v17 = vpop.permute.xlu1 %811 }
 0xd14   :  { %v813_v27 = vrot.slane %v812_v17, 1  ;;  %v2286_v17 = vld [vmem:[%s3037_s5] ss:$8 sps:$4 sm:$0xff]  }
 0xd16   :  { %2370 = vtanh.f32 %v813_v27  ;;  %v2288_v27 = vld [vmem:[%s3037_s5 + $0x4] ss:$8 sps:$4 sm:$0xff]  }
 0xd17   :  { %1096 = vmatprep.subr.bf16.mxu0 %v2288_v27 }
 0xd20   :  { %v2371_v29 = vpop.eup %2370 }
 0xd21   :  { %v817_v30 = vmul.f32 %v2371_v29, %v2369_v28  ;;  %v2289_v28 = vld [vmem:[%s3038_s6] ss:$8 sps:$4 sm:$0xff]   ;;  %v2291_v29 = vld [vmem:[%s3038_s6 + $0x4] ss:$8 sps:$4 sm:$0xff]  }
 0xd22   :  { %1187 = vmatprep.subr.bf16.mxu1 %v2291_v29 }
 0xd23   :  { %819 = vrot.lane.b32.xlu0 %v817_v30, %s2484_s4  ;;  %v2294_v30 = vld [vmem:[%s3037_s5 + $0x14] ss:$8 sps:$4 sm:$0xff]  }
 0xd95   :  { %v820_v31 = vpop.permute.xlu0 %819 }
 0xd96   :  { %v822_v32 = vadd.f32 %v820_v31, %v816_v3  ;;  %v2292_v3 = vld [vmem:[%s3037_s5 + $0x10] ss:$8 sps:$4 sm:$0xff]  }
 0xd98   :  { %2372 = vtanh.f32 %v822_v32 }
 0xda2   :  { %v2373_v33 = vpop.eup %2372 }
 0xda3   :  { %828 = vrot.lane.b32.xlu1 %v2373_v33, %s2484_s4 }
 0xe15   :  { %v829_v35 = vpop.permute.xlu1 %828 }
 0xe16   :  { %v831_v37 = vmul.f32 %v829_v35, %v825_v34  ;;  %v2295_v34 = vld [vmem:[%s3038_s6 + $0x10] ss:$8 sps:$4 sm:$0xff]   ;;  %v2297_v35 = vld [vmem:[%s3038_s6 + $0x14] ss:$8 sps:$4 sm:$0xff]  }
 0xe18   :  { %832 = vst.msk [vmem:[#allocation4 + $0x5] sm:$0x1] %vm335_vm1, %v831_v37  ;;  %v839_v38 = vpack.c.bf16 %v831_v37, %v831_v37 }
 0xe19   :  { %833 = vst.msk [vmem:[#allocation4 + $0x2] sm:$0x1] %vm337_vm2, %v831_v37  ;;  %v2298_v37 = vld [vmem:[%s3037_s5 + $0x20] ss:$8 sps:$4 sm:$0xff]  }
 0xe1a   :  { %2188 = vmatmul.mubr.msk.bf16.vlgmr.msra.gmra.mrb[12].mxu0 %vm243_vm3, %v839_v38  ;;  %v2300_v38 = vld [vmem:[%s3037_s5 + $0x24] ss:$8 sps:$4 sm:$0xff]  }
 0xe1b   :  { %1128 = vmatprep.mubr.bf16.mxu0 %v2482_v2  ;;  %1097 = vmatpush1.bf16.msra.mxu0 %v2286_v17 }
 0xe1c   :  { %1098 = vmatprep.subr.bf16.mxu0 %v2294_v30 }
 0xe1f   :  { %1099 = vmatpush1.bf16.msra.mxu0 %v2292_v3 }
 0xe20   :  { %1100 = vmatprep.subr.bf16.mxu0 %v2300_v38 }
 0xe23   :  { %1101 = vmatpush1.bf16.msra.mxu0 %v2298_v37 }
 0xeed   :  { %v877_v39 = vpop.f32.mrb[12].mxu0 }
 0xeee   :  { %v879_v40 = vpop.f32.mrb[13].mxu0 }
 0xeef   :  { %v886_v41 = vcombine.low %v877_v39, %v879_v40  ;;  %v881_v42 = vpop.f32.mrb[14].mxu0  ;;  %v2303_v39 = vld [vmem:[%s3038_s6 + $0x24] ss:$8 sps:$4 sm:$0xff]   ;;  %v2306_v40 = vld [vmem:[%s3037_s5 + $0x34] ss:$8 sps:$4 sm:$0xff]  }
 0xef0   :  { %v882_v43 = vpop.f32.mrb[15].mxu0  ;;  %v2304_v42 = vld [vmem:[%s3037_s5 + $0x30] ss:$8 sps:$4 sm:$0xff]   ;;  %1102 = vmatprep.subr.bf16.mxu0 %v2306_v40 }
 0xef1   :  { %v893_v45 = vrot.slane %v886_v41, %v2661_v36  ;;  %v2301_v41 = vld [vmem:[%s3038_s6 + $0x20] ss:$8 sps:$4 sm:$0xff]   ;;  %v2309_v43 = vld [vmem:[%s3038_s6 + $0x34] ss:$8 sps:$4 sm:$0xff]   ;;  %1103 = vmatpush1.bf16.msra.mxu0 %v2304_v42 }
 0xef2   :  { %1281 = vmatprep.subr.bf16.mxu0 %v2816_v44 }
 0xef3   :  { %v900_v47 = vrot.slane %v893_v45, %v2661_v36  ;;  %v2307_v45 = vld [vmem:[%s3038_s6 + $0x30] ss:$8 sps:$4 sm:$0xff]  }
 0xef5   :  { %v902_v49 = vadd.f32 %v900_v47, %v838_v48 }
 0xef7   :  { %910 = vrot.lane.b32.xlu0 %v902_v49, %s2484_s4  ;;  %v2189_v50 = vmul.f32 -1.442695, %v902_v49 }
 0xef9   :  { %2374 = vpow2.f32 %v2189_v50 }
 0xf03   :  { %v2375_v51 = vpop.eup %2374 }
 0xf04   :  { %v906_v52 = vadd.f32 1.0, %v2375_v51  ;;  %v2829_v51 = vld [vmem:[%s3039_s7] ss:$8 sps:$4 sm:$0xff]  }
 0xf06   :  { %2376 = vrcp.f32 %v906_v52 }
 0xf10   :  { %v2377_v55 = vpop.eup %2376 }
 0xf11   :  { %v915_v58 = vmul.f32 %v2377_v55, %v822_v32  ;;  %v924_v62 = vrot.slane %v2377_v55, 1 }
 0xf69   :  { %v911_v53 = vpop.permute.xlu0 %910 }
 0xf6a   :  { %v912_v54 = vrot.slane %v911_v53, 1  ;;  %v2834_v53 = vld [vmem:[%s3039_s7 + $0x14] ss:$8 sps:$4 sm:$0xff]  }
 0xf6c   :  { %2378 = vtanh.f32 %v912_v54  ;;  %v2842_v54 = vld [vmem:[%s3039_s7 + $0x10] ss:$8 sps:$4 sm:$0xff]  }
 0xf76   :  { %v2379_v56 = vpop.eup %2378 }
 0xf77   :  { %v916_v57 = vmul.f32 %v2379_v56, %v2377_v55  ;;  %v2849_v55 = vld [vmem:[%s3039_s7 + $0x24] ss:$8 sps:$4 sm:$0xff]   ;;  %v2858_v56 = vld [vmem:[%s3039_s7 + $0x20] ss:$8 sps:$4 sm:$0xff]  }
 0xf79   :  { %918 = vrot.lane.b32.xlu1 %v916_v57, %s2484_s4  ;;  %v2864_v57 = vld [vmem:[%s3039_s7 + $0x34] ss:$8 sps:$4 sm:$0xff]  }
 0xfeb   :  { %v919_v59 = vpop.permute.xlu1 %918 }
 0xfec   :  { %v921_v60 = vadd.f32 %v919_v59, %v915_v58  ;;  %v2872_v58 = vld [vmem:[%s3039_s7 + $0x30] ss:$8 sps:$4 sm:$0xff]   ;;  %v1041_v59 = vld [vmem:[%s3040_s8] sm:$0x3] }
 0xfee   :  { %2380 = vtanh.f32 %v921_v60 }
 0xff8   :  { %v2381_v61 = vpop.eup %2380 }
 0xff9   :  { %927 = vrot.lane.b32.xlu0 %v2381_v61, %s2484_s4  ;;  %v1050_v61 = vrot.slane %v1041_v59, %v53_v22 }
0x106b   :  { %v928_v63 = vpop.permute.xlu0 %927 }
0x106c   :  { %v930_v0 = vmul.f32 %v928_v63, %v924_v62 }
0x106e   :  { %931 = vst.msk [vmem:[#allocation4 + $0x6] sm:$0x1] %vm335_vm1, %v930_v0  ;;  %v937_v1 = vpack.c.bf16 %v930_v0, %v930_v0 }
0x106f   :  { %932 = vst.msk [vmem:[#allocation4 + $0x1] sm:$0x1] %vm337_vm2, %v930_v0 }
0x1070   :  { %2190 = vmatmul.mubr.msk.bf16.vlgmr.msra.gmra.mrb[20].mxu1 %vm243_vm3, %v937_v1 }
0x1071   :  { %1219 = vmatprep.mubr.bf16.mxu1 %v2482_v2  ;;  %1188 = vmatpush1.bf16.msra.mxu1 %v2289_v28 }
0x1072   :  { %1189 = vmatprep.subr.bf16.mxu1 %v2297_v35 }
0x1075   :  { %1190 = vmatpush1.bf16.msra.mxu1 %v2295_v34 }
0x1076   :  { %1191 = vmatprep.subr.bf16.mxu1 %v2303_v39 }
0x1079   :  { %1192 = vmatpush1.bf16.msra.mxu1 %v2301_v41 }
0x107a   :  { %1193 = vmatprep.subr.bf16.mxu1 %v2309_v43 }
0x107d   :  { %1194 = vmatpush1.bf16.msra.mxu1 %v2307_v45 }
0x107e   :  { %1378 = vmatprep.subr.bf16.mxu1 %v2816_v44 }
0x1143   :  { %v975_v5 = vpop.f32.mrb[20].mxu1 }
0x1144   :  { %v977_v6 = vpop.f32.mrb[21].mxu1 }
0x1145   :  { %v984_v9 = vcombine.low %v975_v5, %v977_v6  ;;  %v979_v10 = vpop.f32.mrb[22].mxu1 }
0x1146   :  { %v980_v11 = vpop.f32.mrb[23].mxu1 }
0x1147   :  { %v991_v15 = vrot.slane %v984_v9, %v2661_v36 }
0x1149   :  { %v998_v21 = vrot.slane %v991_v15, %v2661_v36 }
0x114b   :  { %v1000_v4 = vadd.f32 %v998_v21, %v936_v23 }
0x114d   :  { %1008 = vrot.lane.b32.xlu1 %v1000_v4, %s2484_s4  ;;  %v2191_v24 = vmul.f32 -1.442695, %v1000_v4 }
0x114f   :  { %2382 = vpow2.f32 %v2191_v24 }
0x1159   :  { %v2383_v25 = vpop.eup %2382 }
0x115a   :  { %v1004_v7 = vadd.f32 1.0, %v2383_v25 }
0x115c   :  { %2384 = vrcp.f32 %v1004_v7 }
0x1166   :  { %v2385_v12 = vpop.eup %2384 }
0x1167   :  { %v1013_v31 = vmul.f32 %v2385_v12, %v921_v60  ;;  %v1022_v47 = vrot.slane %v2385_v12, 1  ;;  %v1046_v60 = vrot.slane %v1041_v59, %v49_v20 }
0x11bf   :  { %v1009_v8 = vpop.permute.xlu1 %1008 }
0x11c0   :  { %v1010_v26 = vrot.slane %v1009_v8, 1 }
0x11c2   :  { %2386 = vtanh.f32 %v1010_v26 }
0x11cc   :  { %v2387_v13 = vpop.eup %2386 }
0x11cd   :  { %v1014_v16 = vmul.f32 %v2387_v13, %v2385_v12 }
0x11cf   :  { %1016 = vrot.lane.b32.xlu0 %v1014_v16, %s2484_s4 }
0x1241   :  { %v1017_v32 = vpop.permute.xlu0 %1016 }
0x1242   :  { %v1019_v33 = vadd.f32 %v1017_v32, %v1013_v31 }
0x1244   :  { %2388 = vtanh.f32 %v1019_v33 }
0x124e   :  { %v2389_v46 = vpop.eup %2388 }
0x124f   :  { %1025 = vrot.lane.b32.xlu1 %v2389_v46, %s2484_s4 }
0x12c1   :  { %v1026_v48 = vpop.permute.xlu1 %1025 }
0x12c2   :  { %v1028_v49 = vmul.f32 %v1026_v48, %v1022_v47 }
0x12c4   :  { %1029 = vst.msk [vmem:[#allocation4 + $0x7] sm:$0x1] %vm335_vm1, %v1028_v49 }
0x12c5   :  { %1030 = vst.msk [vmem:[#allocation4] sm:$0x1] %vm337_vm2, %v1028_v49 }
0x12cc   :  { %v1031_v50 = vld [vmem:[#allocation4] sm:$0xff] }
0x12cd   :  { %v1032_v52 = vpack.c.bf16 %v1031_v50, %v1031_v50 }
0x12cf   :  { %2200 = vmatmul.mubr.msk.bf16.vlgmr.msra.gmra.mrb[16].mxu0 %vm243_vm3, %v1032_v52  ;;  %2209 = vmatmul.mubr.msk.bf16.vlgmr.msra.gmra.mrb[24].mxu1 %vm243_vm3, %v1032_v52 }
0x12d0   :  { %1282 = vmatpush1.bf16.msra.mxu0 %v2829_v51  ;;  %1313 = vmatprep.mubr.bf16.mxu0 %v2482_v2 }
0x12d1   :  { %1283 = vmatprep.subr.bf16.mxu0 %v2834_v53  ;;  %1379 = vmatpush1.bf16.msra.mxu1 %v2829_v51 }
0x12d2   :  { %1380 = vmatprep.subr.bf16.mxu1 %v2834_v53  ;;  %1410 = vmatprep.mubr.bf16.mxu1 %v2482_v2 }
0x12d4   :  { %1284 = vmatpush1.bf16.msra.mxu0 %v2842_v54 }
0x12d5   :  { %1285 = vmatprep.subr.bf16.mxu0 %v2849_v55  ;;  %1381 = vmatpush1.bf16.msra.mxu1 %v2842_v54 }
0x12d6   :  { %1382 = vmatprep.subr.bf16.mxu1 %v2849_v55 }
0x12d8   :  { %1286 = vmatpush1.bf16.msra.mxu0 %v2858_v56 }
0x12d9   :  { %1287 = vmatprep.subr.bf16.mxu0 %v2864_v57  ;;  %1383 = vmatpush1.bf16.msra.mxu1 %v2858_v56 }
0x12da   :  { %1384 = vmatprep.subr.bf16.mxu1 %v2864_v57 }
0x12dc   :  { %1288 = vmatpush1.bf16.msra.mxu0 %v2872_v58 }
0x12dd   :  { %1385 = vmatpush1.bf16.msra.mxu1 %v2872_v58  ;;  %1475 = vmatprep.subr.bf16.mxu0 %v2816_v44 }
0x12de   :  { %1572 = vmatprep.subr.bf16.mxu1 %v2816_v44 }
0x12df   :  { %1314 = vmatmul.mubr.bf16.vlgmr.msra.gmra.mrb[20].mxu0 %v2482_v2 }
0x12e0   :  { %1476 = vmatpush1.bf16.msra.mxu0 %v2829_v51  ;;  %1507 = vmatprep.mubr.bf16.mxu0 %v2482_v2 }
0x12e1   :  { %1477 = vmatprep.subr.bf16.mxu0 %v2834_v53 }
0x12e4   :  { %1478 = vmatpush1.bf16.msra.mxu0 %v2842_v54 }
0x12e5   :  { %1479 = vmatprep.subr.bf16.mxu0 %v2849_v55 }
0x12e8   :  { %1480 = vmatpush1.bf16.msra.mxu0 %v2858_v56 }
0x12e9   :  { %1481 = vmatprep.subr.bf16.mxu0 %v2864_v57 }
0x12ec   :  { %1482 = vmatpush1.bf16.msra.mxu0 %v2872_v58 }
0x12ed   :  { %1669 = vmatprep.subr.bf16.mxu0 %v2816_v44 }
0x13a2   :  { %v1130_v62 = vpop.f32.mrb[16].mxu0  ;;  %v1221_v63 = vpop.f32.mrb[24].mxu1 }
0x13a3   :  { %v1131_v0 = vadd.f32 %v1130_v62, %v1046_v60  ;;  %1228 = vst [vmem:[#allocation3] sm:$0xff] %v1221_v63  ;;  %v1132_v1 = vpop.f32.mrb[17].mxu0  ;;  %v1223_v5 = vpop.f32.mrb[25].mxu1 }
0x13a4   :  { %v1133_v6 = vadd.f32 %v1132_v1, %v1050_v61  ;;  %1229 = vst [vmem:[#allocation3 + $0x8] sm:$0xff] %v1223_v5  ;;  %v1134_v9 = vpop.f32.mrb[18].mxu0  ;;  %v1225_v10 = vpop.f32.mrb[26].mxu1 }
0x13a5   :  { %1137 = vst [vmem:[#allocation2] sm:$0xff] %v1131_v0  ;;  %v1135_v11 = vpop.f32.mrb[19].mxu0  ;;  %v1226_v14 = vpop.f32.mrb[27].mxu1 }
0x13a6   :  { %1138 = vst [vmem:[#allocation2 + $0x8] sm:$0xff] %v1133_v6 }
0x13ab   :  { %v1239_v4 = vld [vmem:[#allocation3 + $0x7] ss:$8 sm:$0x3]  ;;  %v1372_v45 = vld [vmem:[#allocation3 + $0x6] ss:$8 sm:$0x3] }
0x13ad   :  { %v1238_v22 = vld [vmem:[#allocation2] ss:$8 sm:$0x3]  ;;  %v1371_v42 = vld [vmem:[#allocation2 + $0x1] ss:$8 sm:$0x3] }
0x13ae   :  { %v1240_v25 = vadd.f32 %v1239_v4, %v1238_v22  ;;  %v1373_v47 = vadd.f32 %v1372_v45, %v1371_v42  ;;  %v1468_v22 = vld [vmem:[#allocation2 + $0x2] ss:$8 sm:$0x3]  ;;  %v1469_v4 = vld [vmem:[#allocation3 + $0x5] ss:$8 sm:$0x3] }
0x13af   :  { %v1565_v42 = vld [vmem:[#allocation2 + $0x3] ss:$8 sm:$0x3]  ;;  %v1566_v45 = vld [vmem:[#allocation3 + $0x4] ss:$8 sm:$0x3] }
0x13b2   :  { %v1315_v15 = vpop.f32.mrb[20].mxu0 }
0x13b3   :  { %v1317_v18 = vpop.f32.mrb[21].mxu0 }
0x13b4   :  { %v1324_v20 = vcombine.low %v1315_v15, %v1317_v18  ;;  %v1319_v21 = vpop.f32.mrb[22].mxu0 }
0x13b5   :  { %v1320_v19 = vpop.f32.mrb[23].mxu0 }
0x13b6   :  { %v1331_v23 = vrot.slane %v1324_v20, %v2661_v36 }
0x13b8   :  { %v1338_v24 = vrot.slane %v1331_v23, %v2661_v36 }
0x13ba   :  { %v1340_v7 = vadd.f32 %v1338_v24, %v1240_v25  ;;  %v1470_v25 = vadd.f32 %v1469_v4, %v1468_v22 }
0x13bc   :  { %1348 = vrot.lane.b32.xlu0 %v1340_v7, %s2484_s4  ;;  %v2218_v8 = vmul.f32 -1.442695, %v1340_v7 }
0x13be   :  { %2390 = vpow2.f32 %v2218_v8 }
0x13c8   :  { %v2391_v26 = vpop.eup %2390 }
0x13c9   :  { %v1344_v12 = vadd.f32 1.0, %v2391_v26 }
0x13cb   :  { %2392 = vrcp.f32 %v1344_v12 }
0x13d5   :  { %v2393_v17 = vpop.eup %2392 }
0x13d6   :  { %v1353_v29 = vmul.f32 0.0, %v2393_v17  ;;  %v1362_v32 = vrot.slane %v2393_v17, 1 }
0x142e   :  { %v1349_v13 = vpop.permute.xlu0 %1348 }
0x142f   :  { %v1350_v16 = vrot.slane %v1349_v13, 1 }
0x1431   :  { %2394 = vtanh.f32 %v1350_v16 }
0x143b   :  { %v2395_v27 = vpop.eup %2394 }
0x143c   :  { %v1354_v28 = vmul.f32 %v2395_v27, %v2393_v17 }
0x143e   :  { %1356 = vrot.lane.b32.xlu1 %v1354_v28, %s2484_s4 }
0x14b0   :  { %v1357_v30 = vpop.permute.xlu1 %1356 }
0x14b1   :  { %v1359_v3 = vadd.f32 %v1357_v30, %v1353_v29 }
0x14b3   :  { %2396 = vtanh.f32 %v1359_v3 }
0x14bd   :  { %v2397_v31 = vpop.eup %2396 }
0x14be   :  { %1365 = vrot.lane.b32.xlu0 %v2397_v31, %s2484_s4 }
0x1530   :  { %v1366_v33 = vpop.permute.xlu0 %1365 }
0x1531   :  { %v1368_v34 = vmul.f32 %v1366_v33, %v1362_v32 }
0x1533   :  { %1369 = vst.msk [vmem:[#allocation5] sm:$0x1] %vm335_vm1, %v1368_v34  ;;  %v1374_v35 = vpack.c.bf16 %v1368_v34, %v1368_v34 }
0x1534   :  { %1370 = vst.msk [vmem:[#allocation5 + $0x7] sm:$0x1] %vm337_vm2, %v1368_v34 }
0x1535   :  { %2219 = vmatmul.mubr.msk.bf16.vlgmr.msra.gmra.mrb[28].mxu1 %vm243_vm3, %v1374_v35 }
0x1536   :  { %1573 = vmatpush1.bf16.msra.mxu1 %v2829_v51  ;;  %1604 = vmatprep.mubr.bf16.mxu1 %v2482_v2 }
0x1537   :  { %1574 = vmatprep.subr.bf16.mxu1 %v2834_v53 }
0x153a   :  { %1575 = vmatpush1.bf16.msra.mxu1 %v2842_v54 }
0x153b   :  { %1576 = vmatprep.subr.bf16.mxu1 %v2849_v55 }
0x153e   :  { %1577 = vmatpush1.bf16.msra.mxu1 %v2858_v56 }
0x153f   :  { %1578 = vmatprep.subr.bf16.mxu1 %v2864_v57 }
0x1542   :  { %1579 = vmatpush1.bf16.msra.mxu1 %v2872_v58 }
0x1543   :  { %1766 = vmatprep.subr.bf16.mxu1 %v2816_v44 }
0x1608   :  { %v1412_v37 = vpop.f32.mrb[28].mxu1 }
0x1609   :  { %v1414_v38 = vpop.f32.mrb[29].mxu1 }
0x160a   :  { %v1421_v39 = vcombine.low %v1412_v37, %v1414_v38  ;;  %v1416_v40 = vpop.f32.mrb[30].mxu1 }
0x160b   :  { %v1417_v41 = vpop.f32.mrb[31].mxu1 }
0x160c   :  { %v1428_v43 = vrot.slane %v1421_v39, %v2661_v36 }
0x160e   :  { %v1435_v46 = vrot.slane %v1428_v43, %v2661_v36 }
0x1610   :  { %v1437_v48 = vadd.f32 %v1435_v46, %v1373_v47  ;;  %v1567_v47 = vadd.f32 %v1566_v45, %v1565_v42 }
0x1612   :  { %1445 = vrot.lane.b32.xlu1 %v1437_v48, %s2484_s4  ;;  %v2220_v49 = vmul.f32 -1.442695, %v1437_v48 }
0x1614   :  { %2398 = vpow2.f32 %v2220_v49 }
0x161e   :  { %v2399_v50 = vpop.eup %2398 }
0x161f   :  { %v1441_v52 = vadd.f32 1.0, %v2399_v50 }
0x1621   :  { %2400 = vrcp.f32 %v1441_v52 }
0x162b   :  { %v2401_v61 = vpop.eup %2400 }
0x162c   :  { %v1450_v0 = vmul.f32 %v2401_v61, %v1359_v3  ;;  %v1459_v9 = vrot.slane %v2401_v61, 1 }
0x1684   :  { %v1446_v59 = vpop.permute.xlu1 %1445 }
0x1685   :  { %v1447_v60 = vrot.slane %v1446_v59, 1 }
0x1687   :  { %2402 = vtanh.f32 %v1447_v60 }
0x1691   :  { %v2403_v62 = vpop.eup %2402 }
0x1692   :  { %v1451_v63 = vmul.f32 %v2403_v62, %v2401_v61 }
0x1694   :  { %1453 = vrot.lane.b32.xlu0 %v1451_v63, %s2484_s4 }
0x1706   :  { %v1454_v1 = vpop.permute.xlu0 %1453 }
0x1707   :  { %v1456_v5 = vadd.f32 %v1454_v1, %v1450_v0 }
0x1709   :  { %2404 = vtanh.f32 %v1456_v5 }
0x1713   :  { %v2405_v6 = vpop.eup %2404 }
0x1714   :  { %1462 = vrot.lane.b32.xlu1 %v2405_v6, %s2484_s4 }
0x1786   :  { %v1463_v10 = vpop.permute.xlu1 %1462 }
0x1787   :  { %v1465_v11 = vmul.f32 %v1463_v10, %v1459_v9 }
0x1789   :  { %1466 = vst.msk [vmem:[#allocation5 + $0x1] sm:$0x1] %vm335_vm1, %v1465_v11  ;;  %v1471_v14 = vpack.c.bf16 %v1465_v11, %v1465_v11 }
0x178a   :  { %1467 = vst.msk [vmem:[#allocation5 + $0x6] sm:$0x1] %vm337_vm2, %v1465_v11 }
0x178b   :  { %2221 = vmatmul.mubr.msk.bf16.vlgmr.msra.gmra.mrb[24].mxu0 %vm243_vm3, %v1471_v14 }
0x178c   :  { %1670 = vmatpush1.bf16.msra.mxu0 %v2829_v51  ;;  %1701 = vmatprep.mubr.bf16.mxu0 %v2482_v2 }
0x178d   :  { %1671 = vmatprep.subr.bf16.mxu0 %v2834_v53 }
0x1790   :  { %1672 = vmatpush1.bf16.msra.mxu0 %v2842_v54 }
0x1791   :  { %1673 = vmatprep.subr.bf16.mxu0 %v2849_v55 }
0x1794   :  { %1674 = vmatpush1.bf16.msra.mxu0 %v2858_v56 }
0x1795   :  { %1675 = vmatprep.subr.bf16.mxu0 %v2864_v57 }
0x1798   :  { %1676 = vmatpush1.bf16.msra.mxu0 %v2872_v58 }
0x1799   :  { %1863 = vmatprep.subr.bf16.mxu0 %v2816_v44 }
0x185e   :  { %v1509_v15 = vpop.f32.mrb[24].mxu0 }
0x185f   :  { %v1511_v18 = vpop.f32.mrb[25].mxu0 }
0x1860   :  { %v1518_v20 = vcombine.low %v1509_v15, %v1511_v18  ;;  %v1513_v21 = vpop.f32.mrb[26].mxu0 }
0x1861   :  { %v1514_v19 = vpop.f32.mrb[27].mxu0 }
0x1862   :  { %v1525_v23 = vrot.slane %v1518_v20, %v2661_v36  ;;  %v1662_v19 = vld [vmem:[#allocation2 + $0x4] ss:$8 sm:$0x3] }
0x1864   :  { %v1532_v24 = vrot.slane %v1525_v23, %v2661_v36  ;;  %v1663_v23 = vld [vmem:[#allocation3 + $0x3] ss:$8 sm:$0x3] }
0x1866   :  { %v1534_v7 = vadd.f32 %v1532_v24, %v1470_v25  ;;  %v1664_v24 = vadd.f32 %v1663_v23, %v1662_v19 }
0x1868   :  { %1542 = vrot.lane.b32.xlu0 %v1534_v7, %s2484_s4  ;;  %v2222_v8 = vmul.f32 -1.442695, %v1534_v7 }
0x186a   :  { %2406 = vpow2.f32 %v2222_v8 }
0x1874   :  { %v2407_v26 = vpop.eup %2406 }
0x1875   :  { %v1538_v12 = vadd.f32 1.0, %v2407_v26 }
0x1877   :  { %2408 = vrcp.f32 %v1538_v12 }
0x1881   :  { %v2409_v17 = vpop.eup %2408 }
0x1882   :  { %v1547_v29 = vmul.f32 %v2409_v17, %v1456_v5  ;;  %v1556_v32 = vrot.slane %v2409_v17, 1 }
0x18da   :  { %v1543_v13 = vpop.permute.xlu0 %1542 }
0x18db   :  { %v1544_v16 = vrot.slane %v1543_v13, 1 }
0x18dd   :  { %2410 = vtanh.f32 %v1544_v16 }
0x18e7   :  { %v2411_v27 = vpop.eup %2410 }
0x18e8   :  { %v1548_v28 = vmul.f32 %v2411_v27, %v2409_v17 }
0x18ea   :  { %1550 = vrot.lane.b32.xlu1 %v1548_v28, %s2484_s4 }
0x195c   :  { %v1551_v30 = vpop.permute.xlu1 %1550 }
0x195d   :  { %v1553_v3 = vadd.f32 %v1551_v30, %v1547_v29 }
0x195f   :  { %2412 = vtanh.f32 %v1553_v3 }
0x1969   :  { %v2413_v31 = vpop.eup %2412 }
0x196a   :  { %1559 = vrot.lane.b32.xlu0 %v2413_v31, %s2484_s4 }
0x19dc   :  { %v1560_v33 = vpop.permute.xlu0 %1559 }
0x19dd   :  { %v1562_v34 = vmul.f32 %v1560_v33, %v1556_v32 }
0x19df   :  { %1563 = vst.msk [vmem:[#allocation5 + $0x2] sm:$0x1] %vm335_vm1, %v1562_v34  ;;  %v1568_v35 = vpack.c.bf16 %v1562_v34, %v1562_v34 }
0x19e0   :  { %1564 = vst.msk [vmem:[#allocation5 + $0x5] sm:$0x1] %vm337_vm2, %v1562_v34 }
0x19e1   :  { %2223 = vmatmul.mubr.msk.bf16.vlgmr.msra.gmra.mrb[32].mxu1 %vm243_vm3, %v1568_v35 }
0x19e2   :  { %1767 = vmatpush1.bf16.msra.mxu1 %v2829_v51  ;;  %1798 = vmatprep.mubr.bf16.mxu1 %v2482_v2 }
0x19e3   :  { %1768 = vmatprep.subr.bf16.mxu1 %v2834_v53 }
0x19e6   :  { %1769 = vmatpush1.bf16.msra.mxu1 %v2842_v54 }
0x19e7   :  { %1770 = vmatprep.subr.bf16.mxu1 %v2849_v55 }
0x19ea   :  { %1771 = vmatpush1.bf16.msra.mxu1 %v2858_v56 }
0x19eb   :  { %1772 = vmatprep.subr.bf16.mxu1 %v2864_v57 }
0x19ee   :  { %1773 = vmatpush1.bf16.msra.mxu1 %v2872_v58 }
0x19ef   :  { %1960 = vmatprep.subr.bf16.mxu1 %v2816_v44 }
0x1ab4   :  { %v1606_v37 = vpop.f32.mrb[32].mxu1 }
0x1ab5   :  { %v1608_v38 = vpop.f32.mrb[33].mxu1 }
0x1ab6   :  { %v1615_v39 = vcombine.low %v1606_v37, %v1608_v38  ;;  %v1610_v40 = vpop.f32.mrb[34].mxu1 }
0x1ab7   :  { %v1611_v41 = vpop.f32.mrb[35].mxu1 }
0x1ab8   :  { %v1622_v43 = vrot.slane %v1615_v39, %v2661_v36  ;;  %v1760_v41 = vld [vmem:[#allocation3 + $0x2] ss:$8 sm:$0x3] }
0x1aba   :  { %v1629_v46 = vrot.slane %v1622_v43, %v2661_v36 }
0x1abc   :  { %v1631_v48 = vadd.f32 %v1629_v46, %v1567_v47 }
0x1abe   :  { %1639 = vrot.lane.b32.xlu1 %v1631_v48, %s2484_s4  ;;  %v2224_v49 = vmul.f32 -1.442695, %v1631_v48 }
0x1ac0   :  { %2414 = vpow2.f32 %v2224_v49 }
0x1aca   :  { %v2415_v50 = vpop.eup %2414 }
0x1acb   :  { %v1635_v52 = vadd.f32 1.0, %v2415_v50 }
0x1acd   :  { %2416 = vrcp.f32 %v1635_v52 }
0x1ad7   :  { %v2417_v60 = vpop.eup %2416 }
0x1ad8   :  { %v1644_v63 = vmul.f32 %v2417_v60, %v1553_v3  ;;  %v1653_v6 = vrot.slane %v2417_v60, 1 }
0x1b30   :  { %v1640_v44 = vpop.permute.xlu1 %1639 }
0x1b31   :  { %v1641_v59 = vrot.slane %v1640_v44, 1 }
0x1b33   :  { %2418 = vtanh.f32 %v1641_v59 }
0x1b3d   :  { %v2419_v61 = vpop.eup %2418 }
0x1b3e   :  { %v1645_v62 = vmul.f32 %v2419_v61, %v2417_v60 }
0x1b40   :  { %1647 = vrot.lane.b32.xlu0 %v1645_v62, %s2484_s4 }
0x1bb2   :  { %v1648_v0 = vpop.permute.xlu0 %1647 }
0x1bb3   :  { %v1650_v1 = vadd.f32 %v1648_v0, %v1644_v63 }
0x1bb5   :  { %2420 = vtanh.f32 %v1650_v1 }
0x1bbf   :  { %v2421_v5 = vpop.eup %2420 }
0x1bc0   :  { %1656 = vrot.lane.b32.xlu1 %v2421_v5, %s2484_s4 }
0x1c32   :  { %v1657_v9 = vpop.permute.xlu1 %1656 }
0x1c33   :  { %v1659_v10 = vmul.f32 %v1657_v9, %v1653_v6  ;;  %v1856_v6 = vld [vmem:[#allocation2 + $0x6] ss:$8 sm:$0x3] }
0x1c35   :  { %1660 = vst.msk [vmem:[#allocation5 + $0x3] sm:$0x1] %vm335_vm1, %v1659_v10  ;;  %v1665_v11 = vpack.c.bf16 %v1659_v10, %v1659_v10 }
0x1c36   :  { %1661 = vst.msk [vmem:[#allocation5 + $0x4] sm:$0x1] %vm337_vm2, %v1659_v10  ;;  %v1857_v10 = vld [vmem:[#allocation3 + $0x1] ss:$8 sm:$0x3] }
0x1c37   :  { %2225 = vmatmul.mubr.msk.bf16.vlgmr.msra.gmra.mrb[28].mxu0 %vm243_vm3, %v1665_v11 }
0x1c38   :  { %1864 = vmatpush1.bf16.msra.mxu0 %v2829_v51  ;;  %1895 = vmatprep.mubr.bf16.mxu0 %v2482_v2 }
0x1c39   :  { %1865 = vmatprep.subr.bf16.mxu0 %v2834_v53 }
0x1c3c   :  { %1866 = vmatpush1.bf16.msra.mxu0 %v2842_v54 }
0x1c3d   :  { %1867 = vmatprep.subr.bf16.mxu0 %v2849_v55 }
0x1c40   :  { %1868 = vmatpush1.bf16.msra.mxu0 %v2858_v56 }
0x1c41   :  { %1869 = vmatprep.subr.bf16.mxu0 %v2864_v57 }
0x1c44   :  { %1870 = vmatpush1.bf16.msra.mxu0 %v2872_v58 }
0x1d0a   :  { %v1703_v14 = vpop.f32.mrb[28].mxu0 }
0x1d0b   :  { %v1705_v15 = vpop.f32.mrb[29].mxu0 }
0x1d0c   :  { %v1712_v18 = vcombine.low %v1703_v14, %v1705_v15  ;;  %v1707_v20 = vpop.f32.mrb[30].mxu0  ;;  %v1858_v14 = vadd.f32 %v1857_v10, %v1856_v6 }
0x1d0d   :  { %v1708_v21 = vpop.f32.mrb[31].mxu0 }
0x1d0e   :  { %v1719_v22 = vrot.slane %v1712_v18, %v2661_v36 }
0x1d10   :  { %v1726_v4 = vrot.slane %v1719_v22, %v2661_v36 }
0x1d12   :  { %v1728_v25 = vadd.f32 %v1726_v4, %v1664_v24 }
0x1d14   :  { %1736 = vrot.lane.b32.xlu0 %v1728_v25, %s2484_s4  ;;  %v2226_v7 = vmul.f32 -1.442695, %v1728_v25 }
0x1d16   :  { %2422 = vpow2.f32 %v2226_v7 }
0x1d20   :  { %v2423_v8 = vpop.eup %2422 }
0x1d21   :  { %v1732_v26 = vadd.f32 1.0, %v2423_v8 }
0x1d23   :  { %2424 = vrcp.f32 %v1732_v26 }
0x1d2d   :  { %v2425_v16 = vpop.eup %2424 }
0x1d2e   :  { %v1741_v28 = vmul.f32 %v2425_v16, %v1650_v1  ;;  %v1750_v31 = vrot.slane %v2425_v16, 1 }
0x1d86   :  { %v1737_v12 = vpop.permute.xlu0 %1736 }
0x1d87   :  { %v1738_v13 = vrot.slane %v1737_v12, 1 }
0x1d89   :  { %2426 = vtanh.f32 %v1738_v13 }
0x1d93   :  { %v2427_v17 = vpop.eup %2426 }
0x1d94   :  { %v1742_v27 = vmul.f32 %v2427_v17, %v2425_v16 }
0x1d96   :  { %1744 = vrot.lane.b32.xlu1 %v1742_v27, %s2484_s4 }
0x1e08   :  { %v1745_v29 = vpop.permute.xlu1 %1744 }
0x1e09   :  { %v1747_v30 = vadd.f32 %v1745_v29, %v1741_v28 }
0x1e0b   :  { %2428 = vtanh.f32 %v1747_v30 }
0x1e15   :  { %v2429_v3 = vpop.eup %2428 }
0x1e16   :  { %1753 = vrot.lane.b32.xlu0 %v2429_v3, %s2484_s4 }
0x1e88   :  { %v1754_v32 = vpop.permute.xlu0 %1753 }
0x1e89   :  { %v1756_v33 = vmul.f32 %v1754_v32, %v1750_v31  ;;  %v1953_v31 = vld [vmem:[#allocation2 + $0x7] ss:$8 sm:$0x3] }
0x1e8b   :  { %1757 = vst.msk [vmem:[#allocation5 + $0x4] sm:$0x1] %vm335_vm1, %v1756_v33  ;;  %v1762_v34 = vpack.c.bf16 %v1756_v33, %v1756_v33 }
0x1e8c   :  { %1758 = vst.msk [vmem:[#allocation5 + $0x3] sm:$0x1] %vm337_vm2, %v1756_v33  ;;  %v1954_v33 = vld [vmem:[#allocation3] ss:$8 sm:$0x3] }
0x1e8d   :  { %2227 = vmatmul.mubr.msk.bf16.vlgmr.msra.gmra.mrb[36].mxu1 %vm243_vm3, %v1762_v34 }
0x1e8e   :  { %1961 = vmatpush1.bf16.msra.mxu1 %v2829_v51  ;;  %1992 = vmatprep.mubr.bf16.mxu1 %v2482_v2  ;;  %v1759_v51 = vld [vmem:[#allocation2 + $0x5] ss:$8 sm:$0x3] }
0x1e8f   :  { %1962 = vmatprep.subr.bf16.mxu1 %v2834_v53 }
0x1e92   :  { %1963 = vmatpush1.bf16.msra.mxu1 %v2842_v54  ;;  %v1761_v54 = vadd.f32 %v1760_v41, %v1759_v51 }
0x1e93   :  { %1964 = vmatprep.subr.bf16.mxu1 %v2849_v55 }
0x1e96   :  { %1965 = vmatpush1.bf16.msra.mxu1 %v2858_v56 }
0x1e97   :  { %1966 = vmatprep.subr.bf16.mxu1 %v2864_v57 }
0x1e9a   :  { %1967 = vmatpush1.bf16.msra.mxu1 %v2872_v58 }
0x1f60   :  { %v1800_v35 = vpop.f32.mrb[36].mxu1 }
0x1f61   :  { %v1802_v37 = vpop.f32.mrb[37].mxu1 }
0x1f62   :  { %v1809_v38 = vcombine.low %v1800_v35, %v1802_v37  ;;  %v1804_v39 = vpop.f32.mrb[38].mxu1  ;;  %v1955_v35 = vadd.f32 %v1954_v33, %v1953_v31 }
0x1f63   :  { %v1805_v40 = vpop.f32.mrb[39].mxu1 }
0x1f64   :  { %v1816_v2 = vrot.slane %v1809_v38, %v2661_v36 }
0x1f66   :  { %v1823_v53 = vrot.slane %v1816_v2, %v2661_v36 }
0x1f68   :  { %v1825_v42 = vadd.f32 %v1823_v53, %v1761_v54 }
0x1f6a   :  { %1833 = vrot.lane.b32.xlu1 %v1825_v42, %s2484_s4  ;;  %v2228_v55 = vmul.f32 -1.442695, %v1825_v42  ;;  %v2485_v42 = vmov 0.0  }
0x1f6b   :  { %2244 = vmatprep.subr.bf16.mxu0 %v2485_v42 }
0x1f6c   :  { %2430 = vpow2.f32 %v2228_v55 }
0x1f76   :  { %v2431_v56 = vpop.eup %2430 }
0x1f77   :  { %v1829_v57 = vadd.f32 1.0, %v2431_v56 }
0x1f79   :  { %2432 = vrcp.f32 %v1829_v57 }
0x1f83   :  { %v2433_v45 = vpop.eup %2432 }
0x1f84   :  { %v1838_v48 = vmul.f32 %v2433_v45, %v1747_v30  ;;  %v1847_v44 = vrot.slane %v2433_v45, 1 }
0x1fdc   :  { %v1834_v58 = vpop.permute.xlu1 %1833 }
0x1fdd   :  { %v1835_v43 = vrot.slane %v1834_v58, 1  ;;  %v2323_v58 = vld [vmem:[%s3041_s9 + $0x8] sm:$0xff]  }
0x1fdf   :  { %2434 = vtanh.f32 %v1835_v43  ;;  %v2324_v43 = vld [vmem:[%s3041_s9 + $0x10] sm:$0xff]  }
0x1fe9   :  { %v2435_v46 = vpop.eup %2434 }
0x1fea   :  { %v1839_v47 = vmul.f32 %v2435_v46, %v2433_v45  ;;  %v2325_v45 = vld [vmem:[%s3041_s9 + $0x18] sm:$0xff]  }
0x1fec   :  { %1841 = vrot.lane.b32.xlu0 %v1839_v47, %s2484_s4 }
0x205e   :  { %v1842_v49 = vpop.permute.xlu0 %1841 }
0x205f   :  { %v1844_v50 = vadd.f32 %v1842_v49, %v1838_v48 }
0x2061   :  { %2436 = vtanh.f32 %v1844_v50 }
0x206b   :  { %v2437_v52 = vpop.eup %2436 }
0x206c   :  { %1850 = vrot.lane.b32.xlu1 %v2437_v52, %s2484_s4 }
0x20de   :  { %v1851_v59 = vpop.permute.xlu1 %1850 }
0x20df   :  { %v1853_v60 = vmul.f32 %v1851_v59, %v1847_v44  ;;  %v2233_v44 = vld [vmem:[%s3042_s10] ss:$0 sm:$0xff] }
0x20e1   :  { %1854 = vst.msk [vmem:[#allocation5 + $0x5] sm:$0x1] %vm335_vm1, %v1853_v60  ;;  %v1859_v61 = vpack.c.bf16 %v1853_v60, %v1853_v60 }
0x20e2   :  { %1855 = vst.msk [vmem:[#allocation5 + $0x2] sm:$0x1] %vm337_vm2, %v1853_v60 }
0x20e3   :  { %2229 = vmatmul.mubr.msk.bf16.vlgmr.msra.gmra.mrb[32].mxu0 %vm243_vm3, %v1859_v61 }
0x20e4   :  { %2252 = vmatprep.mubr.msk.bf16.mxu0 %vm2486_vm4, %v2485_v42 }
0x21b6   :  { %v1897_v62 = vpop.f32.mrb[32].mxu0 }
0x21b7   :  { %v1899_v63 = vpop.f32.mrb[33].mxu0 }
0x21b8   :  { %v1906_v0 = vcombine.low %v1897_v62, %v1899_v63  ;;  %v1901_v1 = vpop.f32.mrb[34].mxu0 }
0x21b9   :  { %v1902_v5 = vpop.f32.mrb[35].mxu0 }
0x21ba   :  { %v1913_v9 = vrot.slane %v1906_v0, %v2661_v36 }
0x21bc   :  { %v1920_v11 = vrot.slane %v1913_v9, %v2661_v36 }
0x21be   :  { %v1922_v15 = vadd.f32 %v1920_v11, %v1858_v14 }
0x21c0   :  { %1930 = vrot.lane.b32.xlu0 %v1922_v15, %s2484_s4  ;;  %v2230_v18 = vmul.f32 -1.442695, %v1922_v15 }
0x21c2   :  { %2438 = vpow2.f32 %v2230_v18 }
0x21cc   :  { %v2439_v20 = vpop.eup %2438 }
0x21cd   :  { %v1926_v21 = vadd.f32 1.0, %v2439_v20 }
0x21cf   :  { %2440 = vrcp.f32 %v1926_v21 }
0x21d9   :  { %v2441_v23 = vpop.eup %2440 }
0x21da   :  { %v1935_v25 = vmul.f32 %v2441_v23, %v1844_v50  ;;  %v1944_v12 = vrot.slane %v2441_v23, 1 }
0x2232   :  { %v1931_v19 = vpop.permute.xlu0 %1930 }
0x2233   :  { %v1932_v22 = vrot.slane %v1931_v19, 1 }
0x2235   :  { %2442 = vtanh.f32 %v1932_v22 }
0x223f   :  { %v2443_v4 = vpop.eup %2442 }
0x2240   :  { %v1936_v24 = vmul.f32 %v2443_v4, %v2441_v23 }
0x2242   :  { %1938 = vrot.lane.b32.xlu1 %v1936_v24, %s2484_s4 }
0x22b4   :  { %v1939_v7 = vpop.permute.xlu1 %1938 }
0x22b5   :  { %v1941_v8 = vadd.f32 %v1939_v7, %v1935_v25 }
0x22b7   :  { %2444 = vtanh.f32 %v1941_v8 }
0x22c1   :  { %v2445_v26 = vpop.eup %2444 }
0x22c2   :  { %1947 = vrot.lane.b32.xlu0 %v2445_v26, %s2484_s4 }
0x2334   :  { %v1948_v13 = vpop.permute.xlu0 %1947 }
0x2335   :  { %v1950_v16 = vmul.f32 %v1948_v13, %v1944_v12 }
0x2337   :  { %1951 = vst.msk [vmem:[#allocation5 + $0x6] sm:$0x1] %vm335_vm1, %v1950_v16  ;;  %v1956_v17 = vpack.c.bf16 %v1950_v16, %v1950_v16 }
0x2338   :  { %1952 = vst.msk [vmem:[#allocation5 + $0x1] sm:$0x1] %vm337_vm2, %v1950_v16 }
0x2339   :  { %2231 = vmatmul.mubr.msk.bf16.vlgmr.msra.gmra.mrb[40].mxu1 %vm243_vm3, %v1956_v17 }
0x240c   :  { %v1994_v27 = vpop.f32.mrb[40].mxu1 }
0x240d   :  { %v1996_v28 = vpop.f32.mrb[41].mxu1 }
0x240e   :  { %v2003_v29 = vcombine.low %v1994_v27, %v1996_v28  ;;  %v1998_v30 = vpop.f32.mrb[42].mxu1 }
0x240f   :  { %v1999_v3 = vpop.f32.mrb[43].mxu1 }
0x2410   :  { %v2010_v32 = vrot.slane %v2003_v29, %v2661_v36 }
0x2412   :  { %v2017_v34 = vrot.slane %v2010_v32, %v2661_v36  ;;  %v2322_v36 = vld [vmem:[%s3041_s9] sm:$0xff]   ;;  %s2487_s9 = smov [#allocation6]  }
0x2413   :  { %2245 = vmatpush3.bf16.msra.mxu0 %v2322_v36 }
0x2414   :  { %v2019_v37 = vadd.f32 %v2017_v34, %v1955_v35  ;;  %2246 = vmatprep.subr.bf16.mxu0 %v2485_v42 }
0x2416   :  { %2027 = vrot.lane.b32.xlu1 %v2019_v37, %s2484_s4  ;;  %v2232_v38 = vmul.f32 -1.442695, %v2019_v37 }
0x2417   :  { %2247 = vmatpush3.bf16.msra.mxu0 %v2323_v58 }
0x2418   :  { %2446 = vpow2.f32 %v2232_v38  ;;  %2248 = vmatprep.subr.bf16.mxu0 %v2485_v42 }
0x241b   :  { %2249 = vmatpush3.bf16.msra.mxu0 %v2324_v43 }
0x241c   :  { %2250 = vmatprep.subr.bf16.mxu0 %v2485_v42 }
0x241f   :  { %2251 = vmatpush3.bf16.msra.mxu0 %v2325_v45 }
0x2422   :  { %v2447_v39 = vpop.eup %2446 }
0x2423   :  { %v2023_v40 = vadd.f32 1.0, %v2447_v39 }
0x2425   :  { %2448 = vrcp.f32 %v2023_v40 }
0x242f   :  { %v2449_v41 = vpop.eup %2448 }
0x2430   :  { %v2032_v55 = vmul.f32 %v2449_v41, %v1941_v8  ;;  %v2041_v47 = vrot.slane %v2449_v41, 1 }
0x2488   :  { %v2028_v51 = vpop.permute.xlu1 %2027 }
0x2489   :  { %v2029_v2 = vrot.slane %v2028_v51, 1 }
0x248b   :  { %2450 = vtanh.f32 %v2029_v2 }
0x2495   :  { %v2451_v53 = vpop.eup %2450 }
0x2496   :  { %v2033_v54 = vmul.f32 %v2451_v53, %v2449_v41 }
0x2498   :  { %2035 = vrot.lane.b32.xlu0 %v2033_v54, %s2484_s4 }
0x250a   :  { %v2036_v56 = vpop.permute.xlu0 %2035 }
0x250b   :  { %v2038_v57 = vadd.f32 %v2036_v56, %v2032_v55 }
0x250d   :  { %2452 = vtanh.f32 %v2038_v57 }
0x2517   :  { %v2453_v46 = vpop.eup %2452 }
0x2518   :  { %2044 = vrot.lane.b32.xlu1 %v2453_v46, %s2484_s4  ;;  %s2151_s4 = sshll.u32 %s2487_s9, 4  ;;  %s2152_s4 = int_to_ptr.vmem [resolvable:$true] %s2151_s4 }
0x2519   :  { %s2458_s10 = scalar_lea.vmem %s2152_s4, 128  ;;  %p2463_p1 = scmp.lt.s32.totalorder %s2152_s4, %s2152_s4 }
0x251a   :  { %p2459_p0 = scmp.ne.s32.totalorder %s2152_s4, %s2458_s10  ;;  %p2464_p2 = scmp.lt.s32.totalorder %s2458_s10, %s2458_s10 }
0x251c   :  { %p2465_p3 = por %p2464_p2, %p2463_p1 }
0x251e   :  { %p2466_p4 = pnand %p2465_p3, %p2459_p0 }
0x258a   :  { %v2045_v48 = vpop.permute.xlu1 %2044 }
0x258b   :  { %v2047_v49 = vmul.f32 %v2045_v48, %v2041_v47 }
0x258d   :  { %2048 = vst.msk [vmem:[#allocation5 + $0x7] sm:$0x1] %vm335_vm1, %v2047_v49 }
0x258e   :  { %2049 = vst.msk [vmem:[#allocation5] sm:$0x1] %vm337_vm2, %v2047_v49 }
0x2595   :  { %v2050_v50 = vld [vmem:[#allocation5] sm:$0xff] }
0x2596   :  { %v2051_v52 = vpack.c.bf16 %v2050_v50, %v2050_v50 }
0x2598   :  { %2253 = vmatmul.mubr.msk.bf16.vlgmr.msra.gmra.mrb[36].mxu0 %vm243_vm3, %v2051_v52 }
0x266b   :  { %v2128_v59 = vpop.f32.mrb[36].mxu0 }
0x266c   :  { %v2129_v60 = vadd.f32 %v2233_v44, %v2128_v59  ;;  %v2254_v61 = vpop.f32.mrb[37].mxu0 }
0x266d   :  { %v2131_v62 = vpop.f32.mrb[38].mxu0 }
0x266e   :  { %2134 = vmax.xlane.f32.xlu0 %v2129_v60  ;;  %v2255_v63 = vpop.f32.mrb[39].mxu0 }
0x26fb   :  { %v2135_v0 = vpop.xlane.xlu0 %2134 }
0x26fc   :  { %v2136_v1 = vsub.f32 %v2129_v60, %v2135_v0 }
0x26fe   :  { %v2137_v5 = vmul.f32 1.442695, %v2136_v1 }
0x2700   :  { %2454 = vpow2.f32 %v2137_v5 }
0x270a   :  { %v2455_v6 = vpop.eup %2454 }
0x270b   :  { %2139 = vadd.xlane.f32.xlu1 %v2455_v6 }
0x2798   :  { %v2140_v9 = vpop.xlane.xlu1 %2139 }
0x2799   :  { %2456 = vlog2.f32 %v2140_v9 }
0x27a3   :  { %v2457_v10 = vpop.eup %2456 }
0x27a4   :  { %v2142_v11 = vmul.f32 0.6931472, %v2457_v10 }
0x27a6   :  { %v2143_v14 = vsub.f32 %v2136_v1, %v2142_v11 }
0x27a8   :  { %2144 = vst [vmem:[#allocation6] sm:$0xff] %v2143_v14 }
0x27a9   :  { %2469 = shalt.err (!%p2466_p4)
}
0x27aa   :  { %s2470_s6 = scalar_lea.hbm %s3043_s11, 128 }
0x27ab   :  { %p2471_p5 = scmp.ne.s32.totalorder %s3043_s11, %s2470_s6  ;;  %p2474_p6 = scmp.lt.u32.totalorder %s2470_s6, %s3043_s11 }
0x27ad   :  { %p2476_p7 = pnand %p2474_p6, %p2471_p5 }
0x27af   :  { %2479 = shalt.err (!%p2476_p7)
}
0x27b0   :  { %2154 = dma.vmem_to_hbm [thread:$0]  %s2152_s4, 128, %s3043_s11, [#allocation7]  }
0x27b1   :  { %2480 = dma.done.wait [#allocation7], 128  }
0x27b2   :  { %2481 = vsyncadd [#allocation7], 4294967168 }
0x27b3   :  { %2158 = vsyncpa [#allocation7], 1 }

</bundles_post_ra>
